<compile_context>
chip_gen: v6e
topology: v6e:2x2x1
jax: 0.10.0
libtpu: 0.0.40
codegen_flags: <defaults>
</compile_context>

<pallas_src>
import functools

import jax
import jax.numpy as jnp
from jax.experimental import pallas as pl
from jax.experimental.pallas import tpu as pltpu

GROUPS = 4
EPS = 1e-5


def _conv3x3_gn(inp, w_ref, gamma_ref, beta_ref, gmat, hidx, widx, *, H, W):
    """3x3 conv (stride 1, zero pad 1) + GroupNorm on a (Cin, H*W) tile.

    inp   : (Cin, H*W) f32 array (spatial flattened onto lanes)
    w_ref : (Cout, 9*Cin) ref, tap-major / channel-minor
    gamma_ref, beta_ref : (Cout, 1) refs
    gmat  : (Cout, Cout) group-average matrix, pre-scaled by 1/(cg*H*W)
    hidx, widx : (1, H*W) int32 row/col index of each flattened position
    """
    HW = H * W
    cols = []
    for kh in range(3):
        for kw in range(3):
            dh, dw = kh - 1, kw - 1
            if dh == 0 and dw == 0:
                cols.append(inp)
                continue
            d = dh * W + dw
            # shifted[p] = inp[(p + d) % HW]; boundary mask makes it the exact
            # zero-padded shift (wrap/cross-row reads are exactly the invalid ones).
            shifted = pltpu.roll(inp, shift=(-d) % HW, axis=1)
            valid = ((hidx + dh >= 0) & (hidx + dh < H) &
                     (widx + dw >= 0) & (widx + dw < W))
            cols.append(jnp.where(valid, shifted, 0.0))
    im2col = jnp.concatenate(cols, axis=0)                      # (9*Cin, HW)

    # One MXU matmul: K = 9*Cin, N = HW (lane-dense).
    y = jnp.dot(w_ref[...], im2col, preferred_element_type=jnp.float32)  # (Cout, HW)

    # GroupNorm: per-channel sum / sum-of-squares (lane reduce), then group
    # averaging via a tiny matmul (gmat already folds in 1/(cg*H*W)).
    s = jnp.sum(y, axis=1, keepdims=True)                       # (Cout, 1)
    ss = jnp.sum(y * y, axis=1, keepdims=True)                  # (Cout, 1)
    g_mean = jnp.dot(gmat, s, preferred_element_type=jnp.float32)
    g_ex2 = jnp.dot(gmat, ss, preferred_element_type=jnp.float32)
    g_var = g_ex2 - g_mean * g_mean
    inv = jax.lax.rsqrt(g_var + EPS)
    return (y - g_mean) * inv * gamma_ref[...] + beta_ref[...]


def _basic_block_kernel(x_ref, w1_ref, w2_ref, g1_ref, b1_ref, g2_ref, b2_ref,
                        gmat_ref, hidx_ref, widx_ref, out_ref, *, H, W):
    x = x_ref[0]                                  # (C, H*W) — stays in VMEM
    gmat = gmat_ref[...]
    hidx = hidx_ref[...]
    widx = widx_ref[...]

    h1 = _conv3x3_gn(x, w1_ref, g1_ref, b1_ref, gmat, hidx, widx, H=H, W=W)
    h1 = jnp.maximum(h1, 0.0)                     # ReLU
    h2 = _conv3x3_gn(h1, w2_ref, g2_ref, b2_ref, gmat, hidx, widx, H=H, W=W)
    out_ref[0] = (h2 + x).astype(out_ref.dtype)   # residual add (x already resident)


def basic_block_gn_forward(x_nchw, params):
    """BasicBlock_gn.forward (stride=1, downsample=None)."""
    N, C, H, W = x_nchw.shape
    HW = H * W
    Cout = params["w1"].shape[0]
    assert Cout == C, "residual add requires inplanes == planes"

    x_flat = x_nchw.reshape(N, C, HW)             # free: contiguous reshape

    def w_mat(w):  # (O, I, 3, 3) OIHW -> (O, 9*I), tap-major / channel-minor
        o, i = w.shape[0], w.shape[1]
        return jnp.transpose(w, (0, 2, 3, 1)).reshape(o, 9 * i)

    cg = Cout // GROUPS
    gid = jnp.arange(Cout) // cg
    gmat = (gid[:, None] == gid[None, :]).astype(jnp.float32) / (cg * HW)

    pos = jnp.arange(HW, dtype=jnp.int32)
    hidx = (pos // W).reshape(1, HW)
    widx = (pos % W).reshape(1, HW)

    def full(shape):
        return pl.BlockSpec(shape, lambda n, _s=shape: (0,) * len(_s))

    in_specs = [
        pl.BlockSpec((1, C, HW), lambda n: (n, 0, 0)),   # x
        full((Cout, 9 * C)),                             # w1
        full((Cout, 9 * C)),                             # w2
        full((Cout, 1)), full((Cout, 1)),                # gamma1, beta1
        full((Cout, 1)), full((Cout, 1)),                # gamma2, beta2
        full((Cout, Cout)),                              # gmat
        full((1, HW)), full((1, HW)),                    # hidx, widx
    ]

    kernel = functools.partial(_basic_block_kernel, H=H, W=W)
    out = pl.pallas_call(
        kernel,
        out_shape=jax.ShapeDtypeStruct((N, C, HW), jnp.float32),
        grid=(N,),
        in_specs=in_specs,
        out_specs=pl.BlockSpec((1, C, HW), lambda n: (n, 0, 0)),
        compiler_params=pltpu.CompilerParams(
            dimension_semantics=("parallel",)),
    )(x_flat,
      w_mat(params["w1"]), w_mat(params["w2"]),
      params["g1"].reshape(C, 1), params["b1"].reshape(C, 1),
      params["g2"].reshape(C, 1), params["b2"].reshape(C, 1),
      gmat, hidx, widx)
    return out.reshape(N, C, H, W)


# ------------------------- plain-JAX reference ------------------------------
def _conv_ref(x, w):  # x NCHW, w OIHW
    return jax.lax.conv_general_dilated(
        x, w, window_strides=(1, 1), padding=((1, 1), (1, 1)),
        dimension_numbers=("NCHW", "OIHW", "NCHW"))


def _gn_ref(y, gamma, beta, G=GROUPS, eps=EPS):
    N, C, H, W = y.shape
    yg = y.reshape(N, G, C // G, H, W)
    mean = yg.mean(axis=(2, 3, 4), keepdims=True)
    var = ((yg - mean) ** 2).mean(axis=(2, 3, 4), keepdims=True)
    yn = ((yg - mean) / jnp.sqrt(var + eps)).reshape(N, C, H, W)
    return yn * gamma.reshape(1, C, 1, 1) + beta.reshape(1, C, 1, 1)


def _basic_block_ref(x, p):
    out = jnp.maximum(_gn_ref(_conv_ref(x, p["w1"]), p["g1"], p["b1"]), 0.0)
    out = _gn_ref(_conv_ref(out, p["w2"]), p["g2"], p["b2"])
    return out + x


# ----------------------------------- main ------------------------------------
if __name__ == "__main__":
    # BasicBlock_gn(inplanes=8, planes=8, stride=1, downsample=None, pad=1, dilation=1)
    N, C, H, W = 2, 8, 16, 16

    key = jax.random.PRNGKey(0)
    kx, k1, k2, k3, k4, k5, k6 = jax.random.split(key, 7)
    x = jax.random.normal(kx, (N, C, H, W), jnp.float32)

    params = {
        # conv weights stored in PyTorch OIHW layout
        "w1": 0.1 * jax.random.normal(k1, (C, C, 3, 3), jnp.float32),
        "g1": 1.0 + 0.1 * jax.random.normal(k2, (C,), jnp.float32),
        "b1": 0.1 * jax.random.normal(k3, (C,), jnp.float32),
        "w2": 0.1 * jax.random.normal(k4, (C, C, 3, 3), jnp.float32),
        "g2": 1.0 + 0.1 * jax.random.normal(k5, (C,), jnp.float32),
        "b2": 0.1 * jax.random.normal(k6, (C,), jnp.float32),
    }

    out = jax.jit(basic_block_gn_forward)(x, params)
    out = jax.block_until_ready(out)

    ref = jax.block_until_ready(_basic_block_ref(x, params))
    assert out.shape == (N, C, H, W)
    assert jnp.allclose(out, ref, atol=1e-4, rtol=1e-4), \
        f"max abs err {jnp.max(jnp.abs(out - ref))}"

    print("KERNEL_OK")
</pallas_src>

<mosaic_0001>
module attributes {stable_mosaic.version = 11 : i64} {
  func.func @_basic_block_kernel(%arg0: i32, %arg1: memref<1x8x256xf32, #tpu.memory_space<vmem>>, %arg2: memref<8x72xf32, #tpu.memory_space<vmem>>, %arg3: memref<8x72xf32, #tpu.memory_space<vmem>>, %arg4: memref<8x1xf32, #tpu.memory_space<vmem>>, %arg5: memref<8x1xf32, #tpu.memory_space<vmem>>, %arg6: memref<8x1xf32, #tpu.memory_space<vmem>>, %arg7: memref<8x1xf32, #tpu.memory_space<vmem>>, %arg8: memref<8x8xf32, #tpu.memory_space<vmem>>, %arg9: memref<1x256xi32, #tpu.memory_space<vmem>>, %arg10: memref<1x256xi32, #tpu.memory_space<vmem>>, %arg11: memref<1x8x256xf32, #tpu.memory_space<vmem>>) attributes {dimension_semantics = [#tpu.dimension_semantics<parallel>], iteration_bounds = array<i64: 2>, scalar_prefetch = 0 : i64, scratch_operands = 0 : i64, tpu.core_type = #tpu.core_type<tc>, window_params = [{transform_indices = @transform_0, window_bounds = array<i64: 1, 8, 256>}, {pipeline_mode = #tpu.pipeline_mode<synchronous>, transform_indices = @transform_1, window_bounds = array<i64: 8, 72>}, {pipeline_mode = #tpu.pipeline_mode<synchronous>, transform_indices = @transform_2, window_bounds = array<i64: 8, 72>}, {pipeline_mode = #tpu.pipeline_mode<synchronous>, transform_indices = @transform_3, window_bounds = array<i64: 8, 1>}, {pipeline_mode = #tpu.pipeline_mode<synchronous>, transform_indices = @transform_4, window_bounds = array<i64: 8, 1>}, {pipeline_mode = #tpu.pipeline_mode<synchronous>, transform_indices = @transform_5, window_bounds = array<i64: 8, 1>}, {pipeline_mode = #tpu.pipeline_mode<synchronous>, transform_indices = @transform_6, window_bounds = array<i64: 8, 1>}, {pipeline_mode = #tpu.pipeline_mode<synchronous>, transform_indices = @transform_7, window_bounds = array<i64: 8, 8>}, {pipeline_mode = #tpu.pipeline_mode<synchronous>, transform_indices = @transform_8, window_bounds = array<i64: 1, 256>}, {pipeline_mode = #tpu.pipeline_mode<synchronous>, transform_indices = @transform_9, window_bounds = array<i64: 1, 256>}, {transform_indices = @transform_10, window_bounds = array<i64: 1, 8, 256>}]} {
    %c0 = arith.constant 0 : index
    %c0_0 = arith.constant 0 : index
    %c0_1 = arith.constant 0 : index
    %0 = vector.load %arg1[%c0, %c0_0, %c0_1] : memref<1x8x256xf32, #tpu.memory_space<vmem>>, vector<1x8x256xf32>
    %1 = vector.shape_cast %0 : vector<1x8x256xf32> to vector<8x256xf32>
    %c0_2 = arith.constant 0 : index
    %c0_3 = arith.constant 0 : index
    %2 = vector.load %arg8[%c0_2, %c0_3] : memref<8x8xf32, #tpu.memory_space<vmem>>, vector<8x8xf32>
    %c0_4 = arith.constant 0 : index
    %c0_5 = arith.constant 0 : index
    %3 = vector.load %arg9[%c0_4, %c0_5] : memref<1x256xi32, #tpu.memory_space<vmem>>, vector<1x256xi32>
    %c0_6 = arith.constant 0 : index
    %c0_7 = arith.constant 0 : index
    %4 = vector.load %arg10[%c0_6, %c0_7] : memref<1x256xi32, #tpu.memory_space<vmem>>, vector<1x256xi32>
    %c17_i32 = arith.constant 17 : i32
    %5 = tpu.dynamic_rotate %1 by %c17_i32 dim 1 : vector<8x256xf32>, i32 -> vector<8x256xf32>
    %c-1_i32 = arith.constant -1 : i32
    %6 = vector.broadcast %c-1_i32 : i32 to vector<1x256xi32>
    %7 = arith.addi %3, %6 : vector<1x256xi32>
    %c0_i32 = arith.constant 0 : i32
    %8 = vector.broadcast %c0_i32 : i32 to vector<1x256xi32>
    %9 = arith.cmpi sge, %7, %8 : vector<1x256xi32>
    %c-1_i32_8 = arith.constant -1 : i32
    %10 = vector.broadcast %c-1_i32_8 : i32 to vector<1x256xi32>
    %11 = arith.addi %3, %10 : vector<1x256xi32>
    %c16_i32 = arith.constant 16 : i32
    %12 = vector.broadcast %c16_i32 : i32 to vector<1x256xi32>
    %13 = arith.cmpi slt, %11, %12 : vector<1x256xi32>
    %14 = arith.andi %9, %13 : vector<1x256xi1>
    %c-1_i32_9 = arith.constant -1 : i32
    %15 = vector.broadcast %c-1_i32_9 : i32 to vector<1x256xi32>
    %16 = arith.addi %4, %15 : vector<1x256xi32>
    %c0_i32_10 = arith.constant 0 : i32
    %17 = vector.broadcast %c0_i32_10 : i32 to vector<1x256xi32>
    %18 = arith.cmpi sge, %16, %17 : vector<1x256xi32>
    %19 = arith.andi %14, %18 : vector<1x256xi1>
    %c-1_i32_11 = arith.constant -1 : i32
    %20 = vector.broadcast %c-1_i32_11 : i32 to vector<1x256xi32>
    %21 = arith.addi %4, %20 : vector<1x256xi32>
    %c16_i32_12 = arith.constant 16 : i32
    %22 = vector.broadcast %c16_i32_12 : i32 to vector<1x256xi32>
    %23 = arith.cmpi slt, %21, %22 : vector<1x256xi32>
    %24 = arith.andi %19, %23 : vector<1x256xi1>
    %cst = arith.constant 0.000000e+00 : f32
    %25 = vector.shape_cast %24 : vector<1x256xi1> to vector<1x256xi1>
    %26 = vector.broadcast %25 : vector<1x256xi1> to vector<8x256xi1>
    %27 = vector.broadcast %cst : f32 to vector<8x256xf32>
    %28 = arith.select %26, %5, %27 : vector<8x256xi1>, vector<8x256xf32>
    %c16_i32_13 = arith.constant 16 : i32
    %29 = tpu.dynamic_rotate %1 by %c16_i32_13 dim 1 : vector<8x256xf32>, i32 -> vector<8x256xf32>
    %c-1_i32_14 = arith.constant -1 : i32
    %30 = vector.broadcast %c-1_i32_14 : i32 to vector<1x256xi32>
    %31 = arith.addi %3, %30 : vector<1x256xi32>
    %c0_i32_15 = arith.constant 0 : i32
    %32 = vector.broadcast %c0_i32_15 : i32 to vector<1x256xi32>
    %33 = arith.cmpi sge, %31, %32 : vector<1x256xi32>
    %c-1_i32_16 = arith.constant -1 : i32
    %34 = vector.broadcast %c-1_i32_16 : i32 to vector<1x256xi32>
    %35 = arith.addi %3, %34 : vector<1x256xi32>
    %c16_i32_17 = arith.constant 16 : i32
    %36 = vector.broadcast %c16_i32_17 : i32 to vector<1x256xi32>
    %37 = arith.cmpi slt, %35, %36 : vector<1x256xi32>
    %38 = arith.andi %33, %37 : vector<1x256xi1>
    %c0_i32_18 = arith.constant 0 : i32
    %39 = vector.broadcast %c0_i32_18 : i32 to vector<1x256xi32>
    %40 = arith.addi %4, %39 : vector<1x256xi32>
    %c0_i32_19 = arith.constant 0 : i32
    %41 = vector.broadcast %c0_i32_19 : i32 to vector<1x256xi32>
    %42 = arith.cmpi sge, %40, %41 : vector<1x256xi32>
    %43 = arith.andi %38, %42 : vector<1x256xi1>
    %c0_i32_20 = arith.constant 0 : i32
    %44 = vector.broadcast %c0_i32_20 : i32 to vector<1x256xi32>
    %45 = arith.addi %4, %44 : vector<1x256xi32>
    %c16_i32_21 = arith.constant 16 : i32
    %46 = vector.broadcast %c16_i32_21 : i32 to vector<1x256xi32>
    %47 = arith.cmpi slt, %45, %46 : vector<1x256xi32>
    %48 = arith.andi %43, %47 : vector<1x256xi1>
    %cst_22 = arith.constant 0.000000e+00 : f32
    %49 = vector.shape_cast %48 : vector<1x256xi1> to vector<1x256xi1>
    %50 = vector.broadcast %49 : vector<1x256xi1> to vector<8x256xi1>
    %51 = vector.broadcast %cst_22 : f32 to vector<8x256xf32>
    %52 = arith.select %50, %29, %51 : vector<8x256xi1>, vector<8x256xf32>
    %c15_i32 = arith.constant 15 : i32
    %53 = tpu.dynamic_rotate %1 by %c15_i32 dim 1 : vector<8x256xf32>, i32 -> vector<8x256xf32>
    %c-1_i32_23 = arith.constant -1 : i32
    %54 = vector.broadcast %c-1_i32_23 : i32 to vector<1x256xi32>
    %55 = arith.addi %3, %54 : vector<1x256xi32>
    %c0_i32_24 = arith.constant 0 : i32
    %56 = vector.broadcast %c0_i32_24 : i32 to vector<1x256xi32>
    %57 = arith.cmpi sge, %55, %56 : vector<1x256xi32>
    %c-1_i32_25 = arith.constant -1 : i32
    %58 = vector.broadcast %c-1_i32_25 : i32 to vector<1x256xi32>
    %59 = arith.addi %3, %58 : vector<1x256xi32>
    %c16_i32_26 = arith.constant 16 : i32
    %60 = vector.broadcast %c16_i32_26 : i32 to vector<1x256xi32>
    %61 = arith.cmpi slt, %59, %60 : vector<1x256xi32>
    %62 = arith.andi %57, %61 : vector<1x256xi1>
    %c1_i32 = arith.constant 1 : i32
    %63 = vector.broadcast %c1_i32 : i32 to vector<1x256xi32>
    %64 = arith.addi %4, %63 : vector<1x256xi32>
    %c0_i32_27 = arith.constant 0 : i32
    %65 = vector.broadcast %c0_i32_27 : i32 to vector<1x256xi32>
    %66 = arith.cmpi sge, %64, %65 : vector<1x256xi32>
    %67 = arith.andi %62, %66 : vector<1x256xi1>
    %c1_i32_28 = arith.constant 1 : i32
    %68 = vector.broadcast %c1_i32_28 : i32 to vector<1x256xi32>
    %69 = arith.addi %4, %68 : vector<1x256xi32>
    %c16_i32_29 = arith.constant 16 : i32
    %70 = vector.broadcast %c16_i32_29 : i32 to vector<1x256xi32>
    %71 = arith.cmpi slt, %69, %70 : vector<1x256xi32>
    %72 = arith.andi %67, %71 : vector<1x256xi1>
    %cst_30 = arith.constant 0.000000e+00 : f32
    %73 = vector.shape_cast %72 : vector<1x256xi1> to vector<1x256xi1>
    %74 = vector.broadcast %73 : vector<1x256xi1> to vector<8x256xi1>
    %75 = vector.broadcast %cst_30 : f32 to vector<8x256xf32>
    %76 = arith.select %74, %53, %75 : vector<8x256xi1>, vector<8x256xf32>
    %c1_i32_31 = arith.constant 1 : i32
    %77 = tpu.dynamic_rotate %1 by %c1_i32_31 dim 1 : vector<8x256xf32>, i32 -> vector<8x256xf32>
    %c0_i32_32 = arith.constant 0 : i32
    %78 = vector.broadcast %c0_i32_32 : i32 to vector<1x256xi32>
    %79 = arith.addi %3, %78 : vector<1x256xi32>
    %c0_i32_33 = arith.constant 0 : i32
    %80 = vector.broadcast %c0_i32_33 : i32 to vector<1x256xi32>
    %81 = arith.cmpi sge, %79, %80 : vector<1x256xi32>
    %c0_i32_34 = arith.constant 0 : i32
    %82 = vector.broadcast %c0_i32_34 : i32 to vector<1x256xi32>
    %83 = arith.addi %3, %82 : vector<1x256xi32>
    %c16_i32_35 = arith.constant 16 : i32
    %84 = vector.broadcast %c16_i32_35 : i32 to vector<1x256xi32>
    %85 = arith.cmpi slt, %83, %84 : vector<1x256xi32>
    %86 = arith.andi %81, %85 : vector<1x256xi1>
    %c-1_i32_36 = arith.constant -1 : i32
    %87 = vector.broadcast %c-1_i32_36 : i32 to vector<1x256xi32>
    %88 = arith.addi %4, %87 : vector<1x256xi32>
    %c0_i32_37 = arith.constant 0 : i32
    %89 = vector.broadcast %c0_i32_37 : i32 to vector<1x256xi32>
    %90 = arith.cmpi sge, %88, %89 : vector<1x256xi32>
    %91 = arith.andi %86, %90 : vector<1x256xi1>
    %c-1_i32_38 = arith.constant -1 : i32
    %92 = vector.broadcast %c-1_i32_38 : i32 to vector<1x256xi32>
    %93 = arith.addi %4, %92 : vector<1x256xi32>
    %c16_i32_39 = arith.constant 16 : i32
    %94 = vector.broadcast %c16_i32_39 : i32 to vector<1x256xi32>
    %95 = arith.cmpi slt, %93, %94 : vector<1x256xi32>
    %96 = arith.andi %91, %95 : vector<1x256xi1>
    %cst_40 = arith.constant 0.000000e+00 : f32
    %97 = vector.shape_cast %96 : vector<1x256xi1> to vector<1x256xi1>
    %98 = vector.broadcast %97 : vector<1x256xi1> to vector<8x256xi1>
    %99 = vector.broadcast %cst_40 : f32 to vector<8x256xf32>
    %100 = arith.select %98, %77, %99 : vector<8x256xi1>, vector<8x256xf32>
    %c255_i32 = arith.constant 255 : i32
    %101 = tpu.dynamic_rotate %1 by %c255_i32 dim 1 : vector<8x256xf32>, i32 -> vector<8x256xf32>
    %c0_i32_41 = arith.constant 0 : i32
    %102 = vector.broadcast %c0_i32_41 : i32 to vector<1x256xi32>
    %103 = arith.addi %3, %102 : vector<1x256xi32>
    %c0_i32_42 = arith.constant 0 : i32
    %104 = vector.broadcast %c0_i32_42 : i32 to vector<1x256xi32>
    %105 = arith.cmpi sge, %103, %104 : vector<1x256xi32>
    %c0_i32_43 = arith.constant 0 : i32
    %106 = vector.broadcast %c0_i32_43 : i32 to vector<1x256xi32>
    %107 = arith.addi %3, %106 : vector<1x256xi32>
    %c16_i32_44 = arith.constant 16 : i32
    %108 = vector.broadcast %c16_i32_44 : i32 to vector<1x256xi32>
    %109 = arith.cmpi slt, %107, %108 : vector<1x256xi32>
    %110 = arith.andi %105, %109 : vector<1x256xi1>
    %c1_i32_45 = arith.constant 1 : i32
    %111 = vector.broadcast %c1_i32_45 : i32 to vector<1x256xi32>
    %112 = arith.addi %4, %111 : vector<1x256xi32>
    %c0_i32_46 = arith.constant 0 : i32
    %113 = vector.broadcast %c0_i32_46 : i32 to vector<1x256xi32>
    %114 = arith.cmpi sge, %112, %113 : vector<1x256xi32>
    %115 = arith.andi %110, %114 : vector<1x256xi1>
    %c1_i32_47 = arith.constant 1 : i32
    %116 = vector.broadcast %c1_i32_47 : i32 to vector<1x256xi32>
    %117 = arith.addi %4, %116 : vector<1x256xi32>
    %c16_i32_48 = arith.constant 16 : i32
    %118 = vector.broadcast %c16_i32_48 : i32 to vector<1x256xi32>
    %119 = arith.cmpi slt, %117, %118 : vector<1x256xi32>
    %120 = arith.andi %115, %119 : vector<1x256xi1>
    %cst_49 = arith.constant 0.000000e+00 : f32
    %121 = vector.shape_cast %120 : vector<1x256xi1> to vector<1x256xi1>
    %122 = vector.broadcast %121 : vector<1x256xi1> to vector<8x256xi1>
    %123 = vector.broadcast %cst_49 : f32 to vector<8x256xf32>
    %124 = arith.select %122, %101, %123 : vector<8x256xi1>, vector<8x256xf32>
    %c241_i32 = arith.constant 241 : i32
    %125 = tpu.dynamic_rotate %1 by %c241_i32 dim 1 : vector<8x256xf32>, i32 -> vector<8x256xf32>
    %c1_i32_50 = arith.constant 1 : i32
    %126 = vector.broadcast %c1_i32_50 : i32 to vector<1x256xi32>
    %127 = arith.addi %3, %126 : vector<1x256xi32>
    %c0_i32_51 = arith.constant 0 : i32
    %128 = vector.broadcast %c0_i32_51 : i32 to vector<1x256xi32>
    %129 = arith.cmpi sge, %127, %128 : vector<1x256xi32>
    %c1_i32_52 = arith.constant 1 : i32
    %130 = vector.broadcast %c1_i32_52 : i32 to vector<1x256xi32>
    %131 = arith.addi %3, %130 : vector<1x256xi32>
    %c16_i32_53 = arith.constant 16 : i32
    %132 = vector.broadcast %c16_i32_53 : i32 to vector<1x256xi32>
    %133 = arith.cmpi slt, %131, %132 : vector<1x256xi32>
    %134 = arith.andi %129, %133 : vector<1x256xi1>
    %c-1_i32_54 = arith.constant -1 : i32
    %135 = vector.broadcast %c-1_i32_54 : i32 to vector<1x256xi32>
    %136 = arith.addi %4, %135 : vector<1x256xi32>
    %c0_i32_55 = arith.constant 0 : i32
    %137 = vector.broadcast %c0_i32_55 : i32 to vector<1x256xi32>
    %138 = arith.cmpi sge, %136, %137 : vector<1x256xi32>
    %139 = arith.andi %134, %138 : vector<1x256xi1>
    %c-1_i32_56 = arith.constant -1 : i32
    %140 = vector.broadcast %c-1_i32_56 : i32 to vector<1x256xi32>
    %141 = arith.addi %4, %140 : vector<1x256xi32>
    %c16_i32_57 = arith.constant 16 : i32
    %142 = vector.broadcast %c16_i32_57 : i32 to vector<1x256xi32>
    %143 = arith.cmpi slt, %141, %142 : vector<1x256xi32>
    %144 = arith.andi %139, %143 : vector<1x256xi1>
    %cst_58 = arith.constant 0.000000e+00 : f32
    %145 = vector.shape_cast %144 : vector<1x256xi1> to vector<1x256xi1>
    %146 = vector.broadcast %145 : vector<1x256xi1> to vector<8x256xi1>
    %147 = vector.broadcast %cst_58 : f32 to vector<8x256xf32>
    %148 = arith.select %146, %125, %147 : vector<8x256xi1>, vector<8x256xf32>
    %c240_i32 = arith.constant 240 : i32
    %149 = tpu.dynamic_rotate %1 by %c240_i32 dim 1 : vector<8x256xf32>, i32 -> vector<8x256xf32>
    %c1_i32_59 = arith.constant 1 : i32
    %150 = vector.broadcast %c1_i32_59 : i32 to vector<1x256xi32>
    %151 = arith.addi %3, %150 : vector<1x256xi32>
    %c0_i32_60 = arith.constant 0 : i32
    %152 = vector.broadcast %c0_i32_60 : i32 to vector<1x256xi32>
    %153 = arith.cmpi sge, %151, %152 : vector<1x256xi32>
    %c1_i32_61 = arith.constant 1 : i32
    %154 = vector.broadcast %c1_i32_61 : i32 to vector<1x256xi32>
    %155 = arith.addi %3, %154 : vector<1x256xi32>
    %c16_i32_62 = arith.constant 16 : i32
    %156 = vector.broadcast %c16_i32_62 : i32 to vector<1x256xi32>
    %157 = arith.cmpi slt, %155, %156 : vector<1x256xi32>
    %158 = arith.andi %153, %157 : vector<1x256xi1>
    %c0_i32_63 = arith.constant 0 : i32
    %159 = vector.broadcast %c0_i32_63 : i32 to vector<1x256xi32>
    %160 = arith.addi %4, %159 : vector<1x256xi32>
    %c0_i32_64 = arith.constant 0 : i32
    %161 = vector.broadcast %c0_i32_64 : i32 to vector<1x256xi32>
    %162 = arith.cmpi sge, %160, %161 : vector<1x256xi32>
    %163 = arith.andi %158, %162 : vector<1x256xi1>
    %c0_i32_65 = arith.constant 0 : i32
    %164 = vector.broadcast %c0_i32_65 : i32 to vector<1x256xi32>
    %165 = arith.addi %4, %164 : vector<1x256xi32>
    %c16_i32_66 = arith.constant 16 : i32
    %166 = vector.broadcast %c16_i32_66 : i32 to vector<1x256xi32>
    %167 = arith.cmpi slt, %165, %166 : vector<1x256xi32>
    %168 = arith.andi %163, %167 : vector<1x256xi1>
    %cst_67 = arith.constant 0.000000e+00 : f32
    %169 = vector.shape_cast %168 : vector<1x256xi1> to vector<1x256xi1>
    %170 = vector.broadcast %169 : vector<1x256xi1> to vector<8x256xi1>
    %171 = vector.broadcast %cst_67 : f32 to vector<8x256xf32>
    %172 = arith.select %170, %149, %171 : vector<8x256xi1>, vector<8x256xf32>
    %c239_i32 = arith.constant 239 : i32
    %173 = tpu.dynamic_rotate %1 by %c239_i32 dim 1 : vector<8x256xf32>, i32 -> vector<8x256xf32>
    %c1_i32_68 = arith.constant 1 : i32
    %174 = vector.broadcast %c1_i32_68 : i32 to vector<1x256xi32>
    %175 = arith.addi %3, %174 : vector<1x256xi32>
    %c0_i32_69 = arith.constant 0 : i32
    %176 = vector.broadcast %c0_i32_69 : i32 to vector<1x256xi32>
    %177 = arith.cmpi sge, %175, %176 : vector<1x256xi32>
    %c1_i32_70 = arith.constant 1 : i32
    %178 = vector.broadcast %c1_i32_70 : i32 to vector<1x256xi32>
    %179 = arith.addi %3, %178 : vector<1x256xi32>
    %c16_i32_71 = arith.constant 16 : i32
    %180 = vector.broadcast %c16_i32_71 : i32 to vector<1x256xi32>
    %181 = arith.cmpi slt, %179, %180 : vector<1x256xi32>
    %182 = arith.andi %177, %181 : vector<1x256xi1>
    %c1_i32_72 = arith.constant 1 : i32
    %183 = vector.broadcast %c1_i32_72 : i32 to vector<1x256xi32>
    %184 = arith.addi %4, %183 : vector<1x256xi32>
    %c0_i32_73 = arith.constant 0 : i32
    %185 = vector.broadcast %c0_i32_73 : i32 to vector<1x256xi32>
    %186 = arith.cmpi sge, %184, %185 : vector<1x256xi32>
    %187 = arith.andi %182, %186 : vector<1x256xi1>
    %c1_i32_74 = arith.constant 1 : i32
    %188 = vector.broadcast %c1_i32_74 : i32 to vector<1x256xi32>
    %189 = arith.addi %4, %188 : vector<1x256xi32>
    %c16_i32_75 = arith.constant 16 : i32
    %190 = vector.broadcast %c16_i32_75 : i32 to vector<1x256xi32>
    %191 = arith.cmpi slt, %189, %190 : vector<1x256xi32>
    %192 = arith.andi %187, %191 : vector<1x256xi1>
    %cst_76 = arith.constant 0.000000e+00 : f32
    %193 = vector.shape_cast %192 : vector<1x256xi1> to vector<1x256xi1>
    %194 = vector.broadcast %193 : vector<1x256xi1> to vector<8x256xi1>
    %195 = vector.broadcast %cst_76 : f32 to vector<8x256xf32>
    %196 = arith.select %194, %173, %195 : vector<8x256xi1>, vector<8x256xf32>
    %197 = tpu.concatenate %28, %52, %76, %100, %1, %124, %148, %172, %196 in 0 : vector<8x256xf32>, vector<8x256xf32>, vector<8x256xf32>, vector<8x256xf32>, vector<8x256xf32>, vector<8x256xf32>, vector<8x256xf32>, vector<8x256xf32>, vector<8x256xf32> -> vector<72x256xf32>
    %c0_77 = arith.constant 0 : index
    %c0_78 = arith.constant 0 : index
    %198 = vector.load %arg2[%c0_77, %c0_78] : memref<8x72xf32, #tpu.memory_space<vmem>>, vector<8x72xf32>
    %cst_79 = arith.constant dense<0.000000e+00> : vector<8x256xf32>
    %199 = tpu.matmul %198, %197, %cst_79 {dimension_numbers = #tpu.dot_dimension_numbers<[1], [0], [0], [1], [0, 0, 1, 1], [], []>} : vector<8x72xf32>, vector<72x256xf32>, vector<8x256xf32> -> vector<8x256xf32>
    %cst_80 = arith.constant dense<0.000000e+00> : vector<8xf32>
    %200 = vector.multi_reduction <add>, %199, %cst_80 [1] : vector<8x256xf32> to vector<8xf32>
    %201 = vector.shape_cast %200 : vector<8xf32> to vector<8x1xf32>
    %202 = arith.mulf %199, %199 : vector<8x256xf32>
    %cst_81 = arith.constant dense<0.000000e+00> : vector<8xf32>
    %203 = vector.multi_reduction <add>, %202, %cst_81 [1] : vector<8x256xf32> to vector<8xf32>
    %204 = vector.shape_cast %203 : vector<8xf32> to vector<8x1xf32>
    %cst_82 = arith.constant dense<0.000000e+00> : vector<8x1xf32>
    %205 = tpu.matmul %2, %201, %cst_82 {dimension_numbers = #tpu.dot_dimension_numbers<[1], [0], [0], [1], [0, 0, 1, 1], [], []>} : vector<8x8xf32>, vector<8x1xf32>, vector<8x1xf32> -> vector<8x1xf32>
    %cst_83 = arith.constant dense<0.000000e+00> : vector<8x1xf32>
    %206 = tpu.matmul %2, %204, %cst_83 {dimension_numbers = #tpu.dot_dimension_numbers<[1], [0], [0], [1], [0, 0, 1, 1], [], []>} : vector<8x8xf32>, vector<8x1xf32>, vector<8x1xf32> -> vector<8x1xf32>
    %207 = arith.mulf %205, %205 : vector<8x1xf32>
    %208 = arith.subf %206, %207 : vector<8x1xf32>
    %cst_84 = arith.constant 9.99999974E-6 : f32
    %209 = vector.broadcast %cst_84 : f32 to vector<8x1xf32>
    %210 = arith.addf %208, %209 : vector<8x1xf32>
    %211 = math.rsqrt %210 : vector<8x1xf32>
    %212 = vector.broadcast %205 : vector<8x1xf32> to vector<8x256xf32>
    %213 = arith.subf %199, %212 : vector<8x256xf32>
    %214 = vector.broadcast %211 : vector<8x1xf32> to vector<8x256xf32>
    %215 = arith.mulf %213, %214 : vector<8x256xf32>
    %c0_85 = arith.constant 0 : index
    %c0_86 = arith.constant 0 : index
    %216 = vector.load %arg4[%c0_85, %c0_86] : memref<8x1xf32, #tpu.memory_space<vmem>>, vector<8x1xf32>
    %217 = vector.broadcast %216 : vector<8x1xf32> to vector<8x256xf32>
    %218 = arith.mulf %215, %217 : vector<8x256xf32>
    %c0_87 = arith.constant 0 : index
    %c0_88 = arith.constant 0 : index
    %219 = vector.load %arg5[%c0_87, %c0_88] : memref<8x1xf32, #tpu.memory_space<vmem>>, vector<8x1xf32>
    %220 = vector.broadcast %219 : vector<8x1xf32> to vector<8x256xf32>
    %221 = arith.addf %218, %220 : vector<8x256xf32>
    %cst_89 = arith.constant 0.000000e+00 : f32
    %222 = vector.broadcast %cst_89 : f32 to vector<8x256xf32>
    %223 = arith.maximumf %221, %222 : vector<8x256xf32>
    %c17_i32_90 = arith.constant 17 : i32
    %224 = tpu.dynamic_rotate %223 by %c17_i32_90 dim 1 : vector<8x256xf32>, i32 -> vector<8x256xf32>
    %c-1_i32_91 = arith.constant -1 : i32
    %225 = vector.broadcast %c-1_i32_91 : i32 to vector<1x256xi32>
    %226 = arith.addi %3, %225 : vector<1x256xi32>
    %c0_i32_92 = arith.constant 0 : i32
    %227 = vector.broadcast %c0_i32_92 : i32 to vector<1x256xi32>
    %228 = arith.cmpi sge, %226, %227 : vector<1x256xi32>
    %c-1_i32_93 = arith.constant -1 : i32
    %229 = vector.broadcast %c-1_i32_93 : i32 to vector<1x256xi32>
    %230 = arith.addi %3, %229 : vector<1x256xi32>
    %c16_i32_94 = arith.constant 16 : i32
    %231 = vector.broadcast %c16_i32_94 : i32 to vector<1x256xi32>
    %232 = arith.cmpi slt, %230, %231 : vector<1x256xi32>
    %233 = arith.andi %228, %232 : vector<1x256xi1>
    %c-1_i32_95 = arith.constant -1 : i32
    %234 = vector.broadcast %c-1_i32_95 : i32 to vector<1x256xi32>
    %235 = arith.addi %4, %234 : vector<1x256xi32>
    %c0_i32_96 = arith.constant 0 : i32
    %236 = vector.broadcast %c0_i32_96 : i32 to vector<1x256xi32>
    %237 = arith.cmpi sge, %235, %236 : vector<1x256xi32>
    %238 = arith.andi %233, %237 : vector<1x256xi1>
    %c-1_i32_97 = arith.constant -1 : i32
    %239 = vector.broadcast %c-1_i32_97 : i32 to vector<1x256xi32>
    %240 = arith.addi %4, %239 : vector<1x256xi32>
    %c16_i32_98 = arith.constant 16 : i32
    %241 = vector.broadcast %c16_i32_98 : i32 to vector<1x256xi32>
    %242 = arith.cmpi slt, %240, %241 : vector<1x256xi32>
    %243 = arith.andi %238, %242 : vector<1x256xi1>
    %cst_99 = arith.constant 0.000000e+00 : f32
    %244 = vector.shape_cast %243 : vector<1x256xi1> to vector<1x256xi1>
    %245 = vector.broadcast %244 : vector<1x256xi1> to vector<8x256xi1>
    %246 = vector.broadcast %cst_99 : f32 to vector<8x256xf32>
    %247 = arith.select %245, %224, %246 : vector<8x256xi1>, vector<8x256xf32>
    %c16_i32_100 = arith.constant 16 : i32
    %248 = tpu.dynamic_rotate %223 by %c16_i32_100 dim 1 : vector<8x256xf32>, i32 -> vector<8x256xf32>
    %c-1_i32_101 = arith.constant -1 : i32
    %249 = vector.broadcast %c-1_i32_101 : i32 to vector<1x256xi32>
    %250 = arith.addi %3, %249 : vector<1x256xi32>
    %c0_i32_102 = arith.constant 0 : i32
    %251 = vector.broadcast %c0_i32_102 : i32 to vector<1x256xi32>
    %252 = arith.cmpi sge, %250, %251 : vector<1x256xi32>
    %c-1_i32_103 = arith.constant -1 : i32
    %253 = vector.broadcast %c-1_i32_103 : i32 to vector<1x256xi32>
    %254 = arith.addi %3, %253 : vector<1x256xi32>
    %c16_i32_104 = arith.constant 16 : i32
    %255 = vector.broadcast %c16_i32_104 : i32 to vector<1x256xi32>
    %256 = arith.cmpi slt, %254, %255 : vector<1x256xi32>
    %257 = arith.andi %252, %256 : vector<1x256xi1>
    %c0_i32_105 = arith.constant 0 : i32
    %258 = vector.broadcast %c0_i32_105 : i32 to vector<1x256xi32>
    %259 = arith.addi %4, %258 : vector<1x256xi32>
    %c0_i32_106 = arith.constant 0 : i32
    %260 = vector.broadcast %c0_i32_106 : i32 to vector<1x256xi32>
    %261 = arith.cmpi sge, %259, %260 : vector<1x256xi32>
    %262 = arith.andi %257, %261 : vector<1x256xi1>
    %c0_i32_107 = arith.constant 0 : i32
    %263 = vector.broadcast %c0_i32_107 : i32 to vector<1x256xi32>
    %264 = arith.addi %4, %263 : vector<1x256xi32>
    %c16_i32_108 = arith.constant 16 : i32
    %265 = vector.broadcast %c16_i32_108 : i32 to vector<1x256xi32>
    %266 = arith.cmpi slt, %264, %265 : vector<1x256xi32>
    %267 = arith.andi %262, %266 : vector<1x256xi1>
    %cst_109 = arith.constant 0.000000e+00 : f32
    %268 = vector.shape_cast %267 : vector<1x256xi1> to vector<1x256xi1>
    %269 = vector.broadcast %268 : vector<1x256xi1> to vector<8x256xi1>
    %270 = vector.broadcast %cst_109 : f32 to vector<8x256xf32>
    %271 = arith.select %269, %248, %270 : vector<8x256xi1>, vector<8x256xf32>
    %c15_i32_110 = arith.constant 15 : i32
    %272 = tpu.dynamic_rotate %223 by %c15_i32_110 dim 1 : vector<8x256xf32>, i32 -> vector<8x256xf32>
    %c-1_i32_111 = arith.constant -1 : i32
    %273 = vector.broadcast %c-1_i32_111 : i32 to vector<1x256xi32>
    %274 = arith.addi %3, %273 : vector<1x256xi32>
    %c0_i32_112 = arith.constant 0 : i32
    %275 = vector.broadcast %c0_i32_112 : i32 to vector<1x256xi32>
    %276 = arith.cmpi sge, %274, %275 : vector<1x256xi32>
    %c-1_i32_113 = arith.constant -1 : i32
    %277 = vector.broadcast %c-1_i32_113 : i32 to vector<1x256xi32>
    %278 = arith.addi %3, %277 : vector<1x256xi32>
    %c16_i32_114 = arith.constant 16 : i32
    %279 = vector.broadcast %c16_i32_114 : i32 to vector<1x256xi32>
    %280 = arith.cmpi slt, %278, %279 : vector<1x256xi32>
    %281 = arith.andi %276, %280 : vector<1x256xi1>
    %c1_i32_115 = arith.constant 1 : i32
    %282 = vector.broadcast %c1_i32_115 : i32 to vector<1x256xi32>
    %283 = arith.addi %4, %282 : vector<1x256xi32>
    %c0_i32_116 = arith.constant 0 : i32
    %284 = vector.broadcast %c0_i32_116 : i32 to vector<1x256xi32>
    %285 = arith.cmpi sge, %283, %284 : vector<1x256xi32>
    %286 = arith.andi %281, %285 : vector<1x256xi1>
    %c1_i32_117 = arith.constant 1 : i32
    %287 = vector.broadcast %c1_i32_117 : i32 to vector<1x256xi32>
    %288 = arith.addi %4, %287 : vector<1x256xi32>
    %c16_i32_118 = arith.constant 16 : i32
    %289 = vector.broadcast %c16_i32_118 : i32 to vector<1x256xi32>
    %290 = arith.cmpi slt, %288, %289 : vector<1x256xi32>
    %291 = arith.andi %286, %290 : vector<1x256xi1>
    %cst_119 = arith.constant 0.000000e+00 : f32
    %292 = vector.shape_cast %291 : vector<1x256xi1> to vector<1x256xi1>
    %293 = vector.broadcast %292 : vector<1x256xi1> to vector<8x256xi1>
    %294 = vector.broadcast %cst_119 : f32 to vector<8x256xf32>
    %295 = arith.select %293, %272, %294 : vector<8x256xi1>, vector<8x256xf32>
    %c1_i32_120 = arith.constant 1 : i32
    %296 = tpu.dynamic_rotate %223 by %c1_i32_120 dim 1 : vector<8x256xf32>, i32 -> vector<8x256xf32>
    %c0_i32_121 = arith.constant 0 : i32
    %297 = vector.broadcast %c0_i32_121 : i32 to vector<1x256xi32>
    %298 = arith.addi %3, %297 : vector<1x256xi32>
    %c0_i32_122 = arith.constant 0 : i32
    %299 = vector.broadcast %c0_i32_122 : i32 to vector<1x256xi32>
    %300 = arith.cmpi sge, %298, %299 : vector<1x256xi32>
    %c0_i32_123 = arith.constant 0 : i32
    %301 = vector.broadcast %c0_i32_123 : i32 to vector<1x256xi32>
    %302 = arith.addi %3, %301 : vector<1x256xi32>
    %c16_i32_124 = arith.constant 16 : i32
    %303 = vector.broadcast %c16_i32_124 : i32 to vector<1x256xi32>
    %304 = arith.cmpi slt, %302, %303 : vector<1x256xi32>
    %305 = arith.andi %300, %304 : vector<1x256xi1>
    %c-1_i32_125 = arith.constant -1 : i32
    %306 = vector.broadcast %c-1_i32_125 : i32 to vector<1x256xi32>
    %307 = arith.addi %4, %306 : vector<1x256xi32>
    %c0_i32_126 = arith.constant 0 : i32
    %308 = vector.broadcast %c0_i32_126 : i32 to vector<1x256xi32>
    %309 = arith.cmpi sge, %307, %308 : vector<1x256xi32>
    %310 = arith.andi %305, %309 : vector<1x256xi1>
    %c-1_i32_127 = arith.constant -1 : i32
    %311 = vector.broadcast %c-1_i32_127 : i32 to vector<1x256xi32>
    %312 = arith.addi %4, %311 : vector<1x256xi32>
    %c16_i32_128 = arith.constant 16 : i32
    %313 = vector.broadcast %c16_i32_128 : i32 to vector<1x256xi32>
    %314 = arith.cmpi slt, %312, %313 : vector<1x256xi32>
    %315 = arith.andi %310, %314 : vector<1x256xi1>
    %cst_129 = arith.constant 0.000000e+00 : f32
    %316 = vector.shape_cast %315 : vector<1x256xi1> to vector<1x256xi1>
    %317 = vector.broadcast %316 : vector<1x256xi1> to vector<8x256xi1>
    %318 = vector.broadcast %cst_129 : f32 to vector<8x256xf32>
    %319 = arith.select %317, %296, %318 : vector<8x256xi1>, vector<8x256xf32>
    %c255_i32_130 = arith.constant 255 : i32
    %320 = tpu.dynamic_rotate %223 by %c255_i32_130 dim 1 : vector<8x256xf32>, i32 -> vector<8x256xf32>
    %c0_i32_131 = arith.constant 0 : i32
    %321 = vector.broadcast %c0_i32_131 : i32 to vector<1x256xi32>
    %322 = arith.addi %3, %321 : vector<1x256xi32>
    %c0_i32_132 = arith.constant 0 : i32
    %323 = vector.broadcast %c0_i32_132 : i32 to vector<1x256xi32>
    %324 = arith.cmpi sge, %322, %323 : vector<1x256xi32>
    %c0_i32_133 = arith.constant 0 : i32
    %325 = vector.broadcast %c0_i32_133 : i32 to vector<1x256xi32>
    %326 = arith.addi %3, %325 : vector<1x256xi32>
    %c16_i32_134 = arith.constant 16 : i32
    %327 = vector.broadcast %c16_i32_134 : i32 to vector<1x256xi32>
    %328 = arith.cmpi slt, %326, %327 : vector<1x256xi32>
    %329 = arith.andi %324, %328 : vector<1x256xi1>
    %c1_i32_135 = arith.constant 1 : i32
    %330 = vector.broadcast %c1_i32_135 : i32 to vector<1x256xi32>
    %331 = arith.addi %4, %330 : vector<1x256xi32>
    %c0_i32_136 = arith.constant 0 : i32
    %332 = vector.broadcast %c0_i32_136 : i32 to vector<1x256xi32>
    %333 = arith.cmpi sge, %331, %332 : vector<1x256xi32>
    %334 = arith.andi %329, %333 : vector<1x256xi1>
    %c1_i32_137 = arith.constant 1 : i32
    %335 = vector.broadcast %c1_i32_137 : i32 to vector<1x256xi32>
    %336 = arith.addi %4, %335 : vector<1x256xi32>
    %c16_i32_138 = arith.constant 16 : i32
    %337 = vector.broadcast %c16_i32_138 : i32 to vector<1x256xi32>
    %338 = arith.cmpi slt, %336, %337 : vector<1x256xi32>
    %339 = arith.andi %334, %338 : vector<1x256xi1>
    %cst_139 = arith.constant 0.000000e+00 : f32
    %340 = vector.shape_cast %339 : vector<1x256xi1> to vector<1x256xi1>
    %341 = vector.broadcast %340 : vector<1x256xi1> to vector<8x256xi1>
    %342 = vector.broadcast %cst_139 : f32 to vector<8x256xf32>
    %343 = arith.select %341, %320, %342 : vector<8x256xi1>, vector<8x256xf32>
    %c241_i32_140 = arith.constant 241 : i32
    %344 = tpu.dynamic_rotate %223 by %c241_i32_140 dim 1 : vector<8x256xf32>, i32 -> vector<8x256xf32>
    %c1_i32_141 = arith.constant 1 : i32
    %345 = vector.broadcast %c1_i32_141 : i32 to vector<1x256xi32>
    %346 = arith.addi %3, %345 : vector<1x256xi32>
    %c0_i32_142 = arith.constant 0 : i32
    %347 = vector.broadcast %c0_i32_142 : i32 to vector<1x256xi32>
    %348 = arith.cmpi sge, %346, %347 : vector<1x256xi32>
    %c1_i32_143 = arith.constant 1 : i32
    %349 = vector.broadcast %c1_i32_143 : i32 to vector<1x256xi32>
    %350 = arith.addi %3, %349 : vector<1x256xi32>
    %c16_i32_144 = arith.constant 16 : i32
    %351 = vector.broadcast %c16_i32_144 : i32 to vector<1x256xi32>
    %352 = arith.cmpi slt, %350, %351 : vector<1x256xi32>
    %353 = arith.andi %348, %352 : vector<1x256xi1>
    %c-1_i32_145 = arith.constant -1 : i32
    %354 = vector.broadcast %c-1_i32_145 : i32 to vector<1x256xi32>
    %355 = arith.addi %4, %354 : vector<1x256xi32>
    %c0_i32_146 = arith.constant 0 : i32
    %356 = vector.broadcast %c0_i32_146 : i32 to vector<1x256xi32>
    %357 = arith.cmpi sge, %355, %356 : vector<1x256xi32>
    %358 = arith.andi %353, %357 : vector<1x256xi1>
    %c-1_i32_147 = arith.constant -1 : i32
    %359 = vector.broadcast %c-1_i32_147 : i32 to vector<1x256xi32>
    %360 = arith.addi %4, %359 : vector<1x256xi32>
    %c16_i32_148 = arith.constant 16 : i32
    %361 = vector.broadcast %c16_i32_148 : i32 to vector<1x256xi32>
    %362 = arith.cmpi slt, %360, %361 : vector<1x256xi32>
    %363 = arith.andi %358, %362 : vector<1x256xi1>
    %cst_149 = arith.constant 0.000000e+00 : f32
    %364 = vector.shape_cast %363 : vector<1x256xi1> to vector<1x256xi1>
    %365 = vector.broadcast %364 : vector<1x256xi1> to vector<8x256xi1>
    %366 = vector.broadcast %cst_149 : f32 to vector<8x256xf32>
    %367 = arith.select %365, %344, %366 : vector<8x256xi1>, vector<8x256xf32>
    %c240_i32_150 = arith.constant 240 : i32
    %368 = tpu.dynamic_rotate %223 by %c240_i32_150 dim 1 : vector<8x256xf32>, i32 -> vector<8x256xf32>
    %c1_i32_151 = arith.constant 1 : i32
    %369 = vector.broadcast %c1_i32_151 : i32 to vector<1x256xi32>
    %370 = arith.addi %3, %369 : vector<1x256xi32>
    %c0_i32_152 = arith.constant 0 : i32
    %371 = vector.broadcast %c0_i32_152 : i32 to vector<1x256xi32>
    %372 = arith.cmpi sge, %370, %371 : vector<1x256xi32>
    %c1_i32_153 = arith.constant 1 : i32
    %373 = vector.broadcast %c1_i32_153 : i32 to vector<1x256xi32>
    %374 = arith.addi %3, %373 : vector<1x256xi32>
    %c16_i32_154 = arith.constant 16 : i32
    %375 = vector.broadcast %c16_i32_154 : i32 to vector<1x256xi32>
    %376 = arith.cmpi slt, %374, %375 : vector<1x256xi32>
    %377 = arith.andi %372, %376 : vector<1x256xi1>
    %c0_i32_155 = arith.constant 0 : i32
    %378 = vector.broadcast %c0_i32_155 : i32 to vector<1x256xi32>
    %379 = arith.addi %4, %378 : vector<1x256xi32>
    %c0_i32_156 = arith.constant 0 : i32
    %380 = vector.broadcast %c0_i32_156 : i32 to vector<1x256xi32>
    %381 = arith.cmpi sge, %379, %380 : vector<1x256xi32>
    %382 = arith.andi %377, %381 : vector<1x256xi1>
    %c0_i32_157 = arith.constant 0 : i32
    %383 = vector.broadcast %c0_i32_157 : i32 to vector<1x256xi32>
    %384 = arith.addi %4, %383 : vector<1x256xi32>
    %c16_i32_158 = arith.constant 16 : i32
    %385 = vector.broadcast %c16_i32_158 : i32 to vector<1x256xi32>
    %386 = arith.cmpi slt, %384, %385 : vector<1x256xi32>
    %387 = arith.andi %382, %386 : vector<1x256xi1>
    %cst_159 = arith.constant 0.000000e+00 : f32
    %388 = vector.shape_cast %387 : vector<1x256xi1> to vector<1x256xi1>
    %389 = vector.broadcast %388 : vector<1x256xi1> to vector<8x256xi1>
    %390 = vector.broadcast %cst_159 : f32 to vector<8x256xf32>
    %391 = arith.select %389, %368, %390 : vector<8x256xi1>, vector<8x256xf32>
    %c239_i32_160 = arith.constant 239 : i32
    %392 = tpu.dynamic_rotate %223 by %c239_i32_160 dim 1 : vector<8x256xf32>, i32 -> vector<8x256xf32>
    %c1_i32_161 = arith.constant 1 : i32
    %393 = vector.broadcast %c1_i32_161 : i32 to vector<1x256xi32>
    %394 = arith.addi %3, %393 : vector<1x256xi32>
    %c0_i32_162 = arith.constant 0 : i32
    %395 = vector.broadcast %c0_i32_162 : i32 to vector<1x256xi32>
    %396 = arith.cmpi sge, %394, %395 : vector<1x256xi32>
    %c1_i32_163 = arith.constant 1 : i32
    %397 = vector.broadcast %c1_i32_163 : i32 to vector<1x256xi32>
    %398 = arith.addi %3, %397 : vector<1x256xi32>
    %c16_i32_164 = arith.constant 16 : i32
    %399 = vector.broadcast %c16_i32_164 : i32 to vector<1x256xi32>
    %400 = arith.cmpi slt, %398, %399 : vector<1x256xi32>
    %401 = arith.andi %396, %400 : vector<1x256xi1>
    %c1_i32_165 = arith.constant 1 : i32
    %402 = vector.broadcast %c1_i32_165 : i32 to vector<1x256xi32>
    %403 = arith.addi %4, %402 : vector<1x256xi32>
    %c0_i32_166 = arith.constant 0 : i32
    %404 = vector.broadcast %c0_i32_166 : i32 to vector<1x256xi32>
    %405 = arith.cmpi sge, %403, %404 : vector<1x256xi32>
    %406 = arith.andi %401, %405 : vector<1x256xi1>
    %c1_i32_167 = arith.constant 1 : i32
    %407 = vector.broadcast %c1_i32_167 : i32 to vector<1x256xi32>
    %408 = arith.addi %4, %407 : vector<1x256xi32>
    %c16_i32_168 = arith.constant 16 : i32
    %409 = vector.broadcast %c16_i32_168 : i32 to vector<1x256xi32>
    %410 = arith.cmpi slt, %408, %409 : vector<1x256xi32>
    %411 = arith.andi %406, %410 : vector<1x256xi1>
    %cst_169 = arith.constant 0.000000e+00 : f32
    %412 = vector.shape_cast %411 : vector<1x256xi1> to vector<1x256xi1>
    %413 = vector.broadcast %412 : vector<1x256xi1> to vector<8x256xi1>
    %414 = vector.broadcast %cst_169 : f32 to vector<8x256xf32>
    %415 = arith.select %413, %392, %414 : vector<8x256xi1>, vector<8x256xf32>
    %416 = tpu.concatenate %247, %271, %295, %319, %223, %343, %367, %391, %415 in 0 : vector<8x256xf32>, vector<8x256xf32>, vector<8x256xf32>, vector<8x256xf32>, vector<8x256xf32>, vector<8x256xf32>, vector<8x256xf32>, vector<8x256xf32>, vector<8x256xf32> -> vector<72x256xf32>
    %c0_170 = arith.constant 0 : index
    %c0_171 = arith.constant 0 : index
    %417 = vector.load %arg3[%c0_170, %c0_171] : memref<8x72xf32, #tpu.memory_space<vmem>>, vector<8x72xf32>
    %cst_172 = arith.constant dense<0.000000e+00> : vector<8x256xf32>
    %418 = tpu.matmul %417, %416, %cst_172 {dimension_numbers = #tpu.dot_dimension_numbers<[1], [0], [0], [1], [0, 0, 1, 1], [], []>} : vector<8x72xf32>, vector<72x256xf32>, vector<8x256xf32> -> vector<8x256xf32>
    %cst_173 = arith.constant dense<0.000000e+00> : vector<8xf32>
    %419 = vector.multi_reduction <add>, %418, %cst_173 [1] : vector<8x256xf32> to vector<8xf32>
    %420 = vector.shape_cast %419 : vector<8xf32> to vector<8x1xf32>
    %421 = arith.mulf %418, %418 : vector<8x256xf32>
    %cst_174 = arith.constant dense<0.000000e+00> : vector<8xf32>
    %422 = vector.multi_reduction <add>, %421, %cst_174 [1] : vector<8x256xf32> to vector<8xf32>
    %423 = vector.shape_cast %422 : vector<8xf32> to vector<8x1xf32>
    %cst_175 = arith.constant dense<0.000000e+00> : vector<8x1xf32>
    %424 = tpu.matmul %2, %420, %cst_175 {dimension_numbers = #tpu.dot_dimension_numbers<[1], [0], [0], [1], [0, 0, 1, 1], [], []>} : vector<8x8xf32>, vector<8x1xf32>, vector<8x1xf32> -> vector<8x1xf32>
    %cst_176 = arith.constant dense<0.000000e+00> : vector<8x1xf32>
    %425 = tpu.matmul %2, %423, %cst_176 {dimension_numbers = #tpu.dot_dimension_numbers<[1], [0], [0], [1], [0, 0, 1, 1], [], []>} : vector<8x8xf32>, vector<8x1xf32>, vector<8x1xf32> -> vector<8x1xf32>
    %426 = arith.mulf %424, %424 : vector<8x1xf32>
    %427 = arith.subf %425, %426 : vector<8x1xf32>
    %cst_177 = arith.constant 9.99999974E-6 : f32
    %428 = vector.broadcast %cst_177 : f32 to vector<8x1xf32>
    %429 = arith.addf %427, %428 : vector<8x1xf32>
    %430 = math.rsqrt %429 : vector<8x1xf32>
    %431 = vector.broadcast %424 : vector<8x1xf32> to vector<8x256xf32>
    %432 = arith.subf %418, %431 : vector<8x256xf32>
    %433 = vector.broadcast %430 : vector<8x1xf32> to vector<8x256xf32>
    %434 = arith.mulf %432, %433 : vector<8x256xf32>
    %c0_178 = arith.constant 0 : index
    %c0_179 = arith.constant 0 : index
    %435 = vector.load %arg6[%c0_178, %c0_179] : memref<8x1xf32, #tpu.memory_space<vmem>>, vector<8x1xf32>
    %436 = vector.broadcast %435 : vector<8x1xf32> to vector<8x256xf32>
    %437 = arith.mulf %434, %436 : vector<8x256xf32>
    %c0_180 = arith.constant 0 : index
    %c0_181 = arith.constant 0 : index
    %438 = vector.load %arg7[%c0_180, %c0_181] : memref<8x1xf32, #tpu.memory_space<vmem>>, vector<8x1xf32>
    %439 = vector.broadcast %438 : vector<8x1xf32> to vector<8x256xf32>
    %440 = arith.addf %437, %439 : vector<8x256xf32>
    %441 = arith.addf %440, %1 : vector<8x256xf32>
    %c0_182 = arith.constant 0 : index
    %c0_183 = arith.constant 0 : index
    %c0_184 = arith.constant 0 : index
    %442 = vector.load %arg11[%c0_182, %c0_183, %c0_184] : memref<1x8x256xf32, #tpu.memory_space<vmem>>, vector<1x8x256xf32>
    %443 = vector.shape_cast %442 : vector<1x8x256xf32> to vector<8x256xf32>
    %444 = vector.shape_cast %441 : vector<8x256xf32> to vector<1x8x256xf32>
    tpu.vector_store %arg11[%c0_182, %c0_183, %c0_184], %444 {strides = array<i32>} : memref<1x8x256xf32, #tpu.memory_space<vmem>>, vector<1x8x256xf32>,
    return
  }
  func.func @transform_0(%arg0: i32) -> (i32, i32, i32) {
    %c0_i32 = arith.constant 0 : i32
    %c0_i32_0 = arith.constant 0 : i32
    %c0_i32_1 = arith.constant 0 : i32
    return %arg0, %c0_i32, %c0_i32_0 : i32, i32, i32
  }
  func.func @transform_1(%arg0: i32) -> (i32, i32) {
    %c0_i32 = arith.constant 0 : i32
    %c0_i32_0 = arith.constant 0 : i32
    %c0_i32_1 = arith.constant 0 : i32
    return %c0_i32, %c0_i32_0 : i32, i32
  }
  func.func @transform_2(%arg0: i32) -> (i32, i32) {
    %c0_i32 = arith.constant 0 : i32
    %c0_i32_0 = arith.constant 0 : i32
    %c0_i32_1 = arith.constant 0 : i32
    return %c0_i32, %c0_i32_0 : i32, i32
  }
  func.func @transform_3(%arg0: i32) -> (i32, i32) {
    %c0_i32 = arith.constant 0 : i32
    %c0_i32_0 = arith.constant 0 : i32
    %c0_i32_1 = arith.constant 0 : i32
    return %c0_i32, %c0_i32_0 : i32, i32
  }
  func.func @transform_4(%arg0: i32) -> (i32, i32) {
    %c0_i32 = arith.constant 0 : i32
    %c0_i32_0 = arith.constant 0 : i32
    %c0_i32_1 = arith.constant 0 : i32
    return %c0_i32, %c0_i32_0 : i32, i32
  }
  func.func @transform_5(%arg0: i32) -> (i32, i32) {
    %c0_i32 = arith.constant 0 : i32
    %c0_i32_0 = arith.constant 0 : i32
    %c0_i32_1 = arith.constant 0 : i32
    return %c0_i32, %c0_i32_0 : i32, i32
  }
  func.func @transform_6(%arg0: i32) -> (i32, i32) {
    %c0_i32 = arith.constant 0 : i32
    %c0_i32_0 = arith.constant 0 : i32
    %c0_i32_1 = arith.constant 0 : i32
    return %c0_i32, %c0_i32_0 : i32, i32
  }
  func.func @transform_7(%arg0: i32) -> (i32, i32) {
    %c0_i32 = arith.constant 0 : i32
    %c0_i32_0 = arith.constant 0 : i32
    %c0_i32_1 = arith.constant 0 : i32
    return %c0_i32, %c0_i32_0 : i32, i32
  }
  func.func @transform_8(%arg0: i32) -> (i32, i32) {
    %c0_i32 = arith.constant 0 : i32
    %c0_i32_0 = arith.constant 0 : i32
    %c0_i32_1 = arith.constant 0 : i32
    return %c0_i32, %c0_i32_0 : i32, i32
  }
  func.func @transform_9(%arg0: i32) -> (i32, i32) {
    %c0_i32 = arith.constant 0 : i32
    %c0_i32_0 = arith.constant 0 : i32
    %c0_i32_1 = arith.constant 0 : i32
    return %c0_i32, %c0_i32_0 : i32, i32
  }
  func.func @transform_10(%arg0: i32) -> (i32, i32, i32) {
    %c0_i32 = arith.constant 0 : i32
    %c0_i32_0 = arith.constant 0 : i32
    %c0_i32_1 = arith.constant 0 : i32
    return %arg0, %c0_i32, %c0_i32_0 : i32, i32, i32
  }
}

</mosaic_0001>

<bundles_post_ra>
// kernel: basic_block_gn_forward.1
= control target key start
LH: loop header
LB: loop body
LE: loop exit
PB: predicated region body
PF: predicated region fallthrough
CT: control target
= control target key end

     0   :  { %s1384_s13 = smov 0   ;;  %s1829_s0 = inlined_call_operand.vmem [shape: f32[2,8,256], index: 0, kind: input, shape index: {}]   ;;  %s1830_s1 = inlined_call_operand.vmem [shape: f32[8,72], index: 1, kind: input, shape index: {}]   ;;  %s1831_s2 = inlined_call_operand.vmem [shape: f32[8,72], index: 2, kind: input, shape index: {}]   ;;  %s1832_s3 = inlined_call_operand.vmem [shape: f32[8,1], index: 3, kind: input, shape index: {}]   ;;  %s1833_s4 = inlined_call_operand.vmem [shape: f32[8,1], index: 4, kind: input, shape index: {}]   ;;  %s1834_s5 = inlined_call_operand.vmem [shape: f32[8,1], index: 5, kind: input, shape index: {}]   ;;  %s1835_s6 = inlined_call_operand.vmem [shape: f32[8,1], index: 6, kind: input, shape index: {}]   ;;  %s1836_s7 = inlined_call_operand.vmem [shape: f32[8,8], index: 7, kind: input, shape index: {}]   ;;  %s1837_s8 = inlined_call_operand.vmem [shape: s32[1,256], index: 8, kind: input, shape index: {}]   ;;  %s1838_s9 = inlined_call_operand.vmem [shape: s32[1,256], index: 9, kind: input, shape index: {}]   ;;  %s1839_s10 = inlined_call_operand.vmem [shape: f32[2,8,256], index: 10, kind: output, shape index: {}]  }
   0x1 LB: > { %s1206_s14 = sadd.s32 4294967295, %s1316_s13   ;;  %p1210_p0 = scmp.ge.s32.totalorder %s1316_s13, 1  ;;  %s1316_s13 = sphi %s1384_s13, %s20_s13  }
   0x2   : > { %p312_p1 = scmp.lt.s32.totalorder %s1316_s13, 3 }
   0x4   : > { %p313_p2 = pnand %p1210_p0, %p312_p1 }
   0x5   : > { %p350_p3 = scmp.lt.s32.totalorder (!%p313_p2), %s1206_s14, 1  ;;  %s1319_s19 = smov (!%p313_p2), 112  }
   0x6   : > { %316 = sbr.rel (%p313_p2) target bundleno = 1682 (0x692), region = 60  ;;  %s1320_s20 = smov (!%p313_p2), 111  }
   0x7   : > { %s1321_s21 = smov (!%p313_p2), 113   ;;  %s1322_s22 = smov (!%p313_p2), 127  }
   0x8   : > { %s1323_s23 = smov (!%p313_p2), 1   ;;  %s1325_s24 = smov (!%p313_p2), 15  }
   0x9   : > { %s1326_s25 = smov (!%p313_p2), 16   ;;  %s1327_s26 = smov (!%p313_p2), 17  }
   0xb   : > { %s1924_s14 = smov (!%p350_p3, %s1206_s14), 1  ;;  %v1318_v0 = vmov 0   ;;  %v1324_v3 = vmov 0.0   ;;  %v363_v4 = vld [vmem:[%s1837_s8] sm:$0x3]  ;;  %v369_v9 = vlaneseq  ;;  %v1875_v45 = vmov 0 }
   0xc   : > { %1304 = vset.pattern.permute.xlu0 %v1318_v0  ;;  %1305 = vset.pattern.permute.xlu1 %v1318_v0  ;;  %s1255_s15 = sshll.u32 %s1924_s14, 4  ;;  %v1446_v5 = vld [vmem:[%s1838_s9] sm:$0x3]  ;;  %v499_v6 = vadd.s32 1, %v363_v4  ;;  %vm452_vm11 = vcmp.ge.s32.totalorder %v363_v4, 0  ;;  %vm453_vm12 = vcmp.lt.s32.totalorder %v363_v4, 16 }
   0xd   : > { %s354_s18 = scalar_lea.vmem %s1829_s0, %s1255_s15  ;;  %631 = vmatprep.mubr.f32.mxu0 %v1324_v3  ;;  %1265 = vmatprep.subr.mxu1 %v1324_v3  ;;  %v1449_v7 = vadd.s32 1, %v1446_v5  ;;  %vm403_vm4 = vcmp.ge.s32.totalorder %v1446_v5, 0  ;;  %v1458_v10 = vadd.s32 4294967295, %v1446_v5  ;;  %vm405_vm7 = vcmp.lt.s32.totalorder %v1446_v5, 16  ;;  %s359_s30 = scalar_lea.vmem %s1839_s10, %s1255_s15 }
   0xe   : > { %v1402_v1 = vld [vmem:[%s354_s18] sm:$0xff]  ;;  %v1408_v2 = vld [vmem:[%s354_s18 + $0x8] sm:$0xff]  ;;  %vm500_vm0 = vcmp.ge.s32.totalorder %v499_v6, 0  ;;  %vm501_vm1 = vcmp.lt.s32.totalorder %v499_v6, 16  ;;  %v385_v11 = vshrl.u32 %v369_v9, 7  ;;  %v374_v16 = vadd.s32 4294967295, %v363_v4 }
   0xf   : > { %518 = vrot.lane.b32.xlu1 %v1402_v1, %s1319_s19  ;;  %540 = vrot.lane.b32.xlu0 %v1402_v1, %s1320_s20  ;;  %vm428_vm2 = vcmp.ge.s32.totalorder %v1449_v7, 0  ;;  %vm1452_vm3 = vmand %vm500_vm0, %vm501_vm1  ;;  %vm430_vm5 = vcmp.lt.s32.totalorder %v1449_v7, 16  ;;  %vm1840_vm9 = vcmp.ge.s32.totalorder %v1458_v10, 0  ;;  %vm1844_vm14 = vcmp.lt.s32.totalorder %v1458_v10, 16 }
  0x10   : > { %vm547_vm6 = vmand %vm1452_vm3, %vm428_vm2  ;;  %v1480_v12 = vsub.s32 1, %v385_v11  ;;  %v1487_v15 = vsub.s32 0, %v385_v11  ;;  %v1491_v17 = vand.u32 127, %v369_v9 }
  0x11   : > { %vm525_vm8 = vmand %vm1452_vm3, %vm403_vm4 }
  0x12   : > { %vm548_vm10 = vmand %vm547_vm6, %vm430_vm5  ;;  %vm375_vm6 = vcmp.ge.s32.totalorder %v374_v16, 0 }
  0x13   : > { %520 = vrot.lane.b32.xlu1 %v1408_v2, %s1319_s19  ;;  %542 = vrot.lane.b32.xlu0 %v1408_v2, %s1320_s20  ;;  %vm526_vm13 = vmand %vm525_vm8, %vm405_vm7  ;;  %v549_v14 = vsel %vm548_vm10, 1, %v1318_v0  ;;  %vm376_vm8 = vcmp.lt.s32.totalorder %v374_v16, 16 }
  0x14   : > { %vm503_vm15 = vmand %vm1452_vm3, %vm1840_vm9  ;;  %v527_v18 = vsel %vm526_vm13, 1, %v1318_v0  ;;  %v557_v19 = vrot.slane %v549_v14, %v1480_v12  ;;  %v553_v22 = vrot.slane %v549_v14, %v1487_v15  ;;  %v1889_v14 = vmov 0 }
  0x15   : > { %vm1482_vm0 = vmand %vm452_vm11, %vm453_vm12  ;;  %v535_v24 = vrot.slane %v527_v18, %v1480_v12  ;;  %vm1842_vm11 = vcmp.lt.s32.totalorder %v1491_v17, 111  ;;  %v531_v25 = vrot.slane %v527_v18, %v1487_v15 }
  0x16   : > { %vm504_vm1 = vmand %vm503_vm15, %vm1844_vm14  ;;  %vm1510_vm13 = vcmp.eq.s32.totalorder %v557_v19, 1 }
  0x17   : > { %494 = vrot.lane.b32.xlu1 %v1408_v2, %s1321_s21  ;;  %492 = vrot.lane.b32.xlu0 %v1402_v1, %s1321_s21  ;;  %vm477_vm3 = vmand %vm1482_vm0, %vm428_vm2  ;;  %v505_v23 = vsel %vm504_vm1, 1, %v1318_v0  ;;  %vm1841_vm1 = vcmp.lt.s32.totalorder %v1491_v17, 112 }
  0x18   : > { %vm478_vm10 = vmand %vm477_vm3, %vm430_vm5  ;;  %v513_v27 = vrot.slane %v505_v23, %v1480_v12  ;;  %vm1520_vm3 = vcmp.eq.s32.totalorder %v553_v22, 1  ;;  %v509_v32 = vrot.slane %v505_v23, %v1487_v15 }
  0x19   : > { %vm455_vm12 = vmand %vm1482_vm0, %vm1840_vm9  ;;  %v479_v33 = vsel %vm478_vm10, 1, %v1318_v0  ;;  %vm1530_vm0 = vcmp.eq.s32.totalorder %v535_v24, 1  ;;  %vm1539_vm9 = vcmp.eq.s32.totalorder %v531_v25, 1 }
  0x1a   : > { %vm1515_vm15 = vmand %vm375_vm6, %vm376_vm8  ;;  %vm1843_vm8 = vcmp.lt.s32.totalorder %v1491_v17, 113  ;;  %v487_v41 = vrot.slane %v479_v33, %v1480_v12  ;;  %v483_v46 = vrot.slane %v479_v33, %v1487_v15  ;;  %v562_v33 = vld [vmem:[%s1830_s1] sm:$0xff] }
  0x1b   : > { %472 = vrot.lane.b32.xlu1 %v1408_v2, %s1322_s22  ;;  %470 = vrot.lane.b32.xlu0 %v1402_v1, %s1322_s22  ;;  %vm456_vm6 = vmand %vm455_vm12, %vm1844_vm14  ;;  %vm1555_vm12 = vcmp.eq.s32.totalorder %v513_v27, 1  ;;  %vm1881_vm14 = vcmp.ge.s32.totalorder %v1458_v10, 0 }
  0x1c   : > { %vm1547_vm10 = vmand %vm1515_vm15, %vm428_vm2  ;;  %vm1564_vm2 = vcmp.eq.s32.totalorder %v509_v32, 1  ;;  %v457_v47 = vsel %vm456_vm6, 1, %v1318_v0 }
  0x1d   : > { %v1876_v45 = vsel %vm1564_vm2, 4294967295, %v1875_v45  ;;  %vm404_vm6 = vmand %vm1515_vm15, %vm403_vm4  ;;  %v465_v51 = vrot.slane %v457_v47, %v1480_v12  ;;  %v461_v55 = vrot.slane %v457_v47, %v1487_v15  ;;  %v808_v47 = vld [vmem:[%s1832_s3] sm:$0xff] }
  0x1e   : > { %vm406_vm4 = vmand %vm404_vm6, %vm405_vm7  ;;  %vm1847_vm6 = vcmp.lt.s32.totalorder %v1491_v17, 15 }
  0x1f   : > { %447 = vrot.lane.b32.xlu1 %v1408_v2, %s1323_s23  ;;  %445 = vrot.lane.b32.xlu0 %v1402_v1, %s1323_s23  ;;  %vm1621_vm7 = vcmp.eq.s32.totalorder %v461_v55, 1  ;;  %v407_v5 = vsel %vm406_vm4, 1, %v1318_v0 }
  0x20   : > { %v415_v9 = vrot.slane %v407_v5, %v1480_v12 }
  0x23   : > { %422 = vrot.lane.b32.xlu1 %v1408_v2, %s1325_s24  ;;  %420 = vrot.lane.b32.xlu0 %v1402_v1, %s1325_s24 }
  0x27   : > { %398 = vrot.lane.b32.xlu1 %v1408_v2, %s1326_s25  ;;  %396 = vrot.lane.b32.xlu0 %v1402_v1, %s1326_s25 }
  0x2b   : > { %367 = vrot.lane.b32.xlu1 %v1408_v2, %s1327_s26  ;;  %365 = vrot.lane.b32.xlu0 %v1402_v1, %s1327_s26 }
  0x81   : > { %v519_v20 = vpop.permute.xlu1 %518  ;;  %v541_v21 = vpop.permute.xlu0 %540 }
  0x85   : > { %v521_v29 = vpop.permute.xlu1 %520  ;;  %v543_v30 = vpop.permute.xlu0 %542 }
  0x86   : > { %v546_v34 = vsel %vm1842_vm11, %v543_v30, %v541_v21  ;;  %v545_v35 = vsel %vm1842_vm11, %v541_v21, %v543_v30  ;;  %v524_v39 = vsel %vm1841_vm1, %v521_v29, %v519_v20  ;;  %v523_v42 = vsel %vm1841_vm1, %v519_v20, %v521_v29  ;;  %vm431_vm1 = vmand %vm1547_vm10, %vm430_vm5 }
  0x87   : > { %1215 = vmatprep.subr.msk.mxu0 %vm1510_vm13, %v546_v34  ;;  %vm1848_vm11 = vcmp.lt.s32.totalorder %v1491_v17, 127  ;;  %vm1594_vm5 = vcmp.eq.s32.totalorder %v483_v46, 1  ;;  %v432_v56 = vsel %vm431_vm1, 1, %v1318_v0  ;;  %vm1846_vm10 = vcmp.lt.s32.totalorder %v1491_v17, 1 }
  0x88   : > { %1216 = vmatpush1.msk.msra.mxu0 %vm1520_vm3, %v545_v35  ;;  %vm1615_vm1 = vcmp.eq.s32.totalorder %v465_v51, 1  ;;  %v440_v60 = vrot.slane %v432_v56, %v1480_v12  ;;  %v436_v4 = vrot.slane %v432_v56, %v1487_v15  ;;  %v1897_v29 = vmov 0 }
  0x89   : > { %v495_v43 = vpop.permute.xlu1 %494  ;;  %1217 = vmatprep.subr.msk.mxu0 %vm1530_vm0, %v524_v39  ;;  %v493_v44 = vpop.permute.xlu0 %492 }
  0x8a   : > { %v497_v48 = vsel %vm1843_vm8, %v493_v44, %v495_v43  ;;  %v498_v49 = vsel %vm1843_vm8, %v495_v43, %v493_v44  ;;  %1218 = vmatpush1.msk.msra.mxu0 %vm1539_vm9, %v523_v42  ;;  %vm1589_vm8 = vcmp.eq.s32.totalorder %v487_v41, 1  ;;  %vm1639_vm4 = vcmp.eq.s32.totalorder %v440_v60, 1  ;;  %v1706_v43 = vld [vmem:[%s1836_s7] sm:$0xff] }
  0x8b   : > { %1219 = vmatprep.subr.msk.mxu0 %vm1555_vm12, %v498_v49 }
  0x8c   : > { %1220 = vmatpush1.msk.msra.mxu0 %vm1564_vm2, %v497_v48  ;;  %vm380_vm2 = vmand %vm1515_vm15, %vm1881_vm14  ;;  %vm1886_vm14 = vcmp.lt.s32.totalorder %v1458_v10, 16  ;;  %v411_v10 = vrot.slane %v407_v5, %v1487_v15 }
  0x8d   : > { %v473_v52 = vpop.permute.xlu1 %472  ;;  %v471_v53 = vpop.permute.xlu0 %470  ;;  %vm382_vm15 = vmand %vm380_vm2, %vm1886_vm14  ;;  %vm1850_vm2 = vcmp.lt.s32.totalorder %v1491_v17, 16  ;;  %vm1659_vm14 = vcmp.eq.s32.totalorder %v415_v9, 1 }
  0x8e   : > { %v475_v57 = vsel %vm1848_vm11, %v471_v53, %v473_v52  ;;  %v476_v58 = vsel %vm1848_vm11, %v473_v52, %v471_v53  ;;  %v383_v16 = vsel %vm382_vm15, 1, %v1318_v0  ;;  %vm1664_vm15 = vcmp.eq.s32.totalorder %v411_v10, 1 }
  0x8f   : > { %1221 = vmatprep.subr.msk.mxu0 %vm1589_vm8, %v476_v58  ;;  %v391_v0 = vrot.slane %v383_v16, %v1480_v12  ;;  %v387_v24 = vrot.slane %v383_v16, %v1487_v15  ;;  %v1895_v12 = vmov 0  ;;  %v816_v58 = vld [vmem:[%s1833_s4] sm:$0xff] }
  0x90   : > { %1222 = vmatpush1.msk.msra.mxu0 %vm1594_vm5, %v475_v57 }
  0x91   : > { %v448_v61 = vpop.permute.xlu1 %447  ;;  %589 = vmatprep.subr.mxu0 %v1408_v2  ;;  %v446_v62 = vpop.permute.xlu0 %445  ;;  %vm1678_vm11 = vcmp.eq.s32.totalorder %v391_v0, 1 }
  0x92   : > { %v450_v6 = vsel %vm1846_vm10, %v446_v62, %v448_v61  ;;  %v451_v7 = vsel %vm1846_vm10, %v448_v61, %v446_v62  ;;  %590 = vmatpush1.msra.mxu0 %v1402_v1  ;;  %vm1644_vm10 = vcmp.eq.s32.totalorder %v436_v4, 1  ;;  %v1896_v12 = vsel %vm1678_vm11, 4294967295, %v1895_v12 }
  0x93   : > { %1223 = vmatprep.subr.msk.mxu0 %vm1615_vm1, %v450_v6  ;;  %v1890_v14 = vsel %vm1644_vm10, 4294967295, %v1889_v14 }
  0x94   : > { %1224 = vmatpush1.msk.msra.mxu0 %vm1621_vm7, %v451_v7 }
  0x95   : > { %v423_v11 = vpop.permute.xlu1 %422  ;;  %v421_v13 = vpop.permute.xlu0 %420 }
  0x96   : > { %v425_v18 = vsel %vm1847_vm6, %v421_v13, %v423_v11  ;;  %v426_v19 = vsel %vm1847_vm6, %v423_v11, %v421_v13  ;;  %vm1851_vm6 = vcmp.lt.s32.totalorder %v1491_v17, 17 }
  0x97   : > { %1225 = vmatprep.subr.msk.mxu0 %vm1639_vm4, %v425_v18 }
  0x98   : > { %1226 = vmatpush1.msk.msra.mxu0 %vm1644_vm10, %v426_v19  ;;  %vm1682_vm10 = vcmp.eq.s32.totalorder %v387_v24, 1 }
  0x99   : > { %v399_v21 = vpop.permute.xlu1 %398  ;;  %v397_v22 = vpop.permute.xlu0 %396  ;;  %v1898_v29 = vsel %vm1682_vm10, 4294967295, %v1897_v29 }
  0x9a   : > { %v401_v25 = vsel %vm1850_vm2, %v397_v22, %v399_v21  ;;  %v402_v27 = vsel %vm1850_vm2, %v399_v21, %v397_v22  ;;  %vm1852_vm2 = vcmask 588800  }
  0x9b   : > { %1227 = vmatprep.subr.msk.mxu0 %vm1659_vm14, %v401_v25 }
  0x9c   : > { %1228 = vmatpush1.msk.msra.mxu0 %vm1664_vm15, %v402_v27 }
  0x9d   : > { %v368_v28 = vpop.permute.xlu1 %367  ;;  %v366_v15 = vpop.permute.xlu0 %365 }
  0x9e   : > { %v372_v30 = vsel %vm1851_vm6, %v366_v15, %v368_v28  ;;  %v373_v32 = vsel %vm1851_vm6, %v368_v28, %v366_v15  ;;  %vm1853_vm6 = vmmov 0  }
  0x9f   : > { %1229 = vmatprep.subr.msk.mxu0 %vm1678_vm11, %v372_v30  ;;  %1267 = vmatprep.mubr.msk.f32.mxu1 %vm1853_vm6, %v1324_v3 }
  0xa0   : > { %1230 = vmatpush1.msk.msra.mxu0 %vm1682_vm10, %v373_v32  ;;  %vm1901_vm10 = vcmp.lt.s32.totalorder %v1491_v17, 112 }
  0xa1   : > { %1231 = vmatmul.mubr.msk.f32.vlgmr.msra.gmra.mxu0 %vm1852_vm2, %v562_v33  ;;  %1275 = vmatprep.subr.mxu0 %v1324_v3  ;;  %vm1854_vm2 = vcmask 64512   ;;  %vm1902_vm11 = vmmov %vm1901_vm10 }
  0xa2   : > { %1277 = vmatprep.mubr.msk.f32.mxu0 %vm1853_vm6, %v1324_v3 }
 0x161   : > { %v633_v34 = vpop.f32.mrf.mxu0 }
 0x162   : > { %v641_v39 = vmul.f32 %v633_v34, %v633_v34 }
 0x163   : > { %v635_v35 = vpop.f32.mrf.mxu0 }
 0x164   : > { %v638_v38 = vadd.f32 %v635_v35, %v633_v34  ;;  %v642_v41 = vmul.f32 %v635_v35, %v635_v35 }
 0x166   : > { %639 = vadd.xlane.f32.xlu0 %v638_v38  ;;  %v643_v42 = vadd.f32 %v642_v41, %v641_v39 }
 0x168   : > { %644 = vadd.xlane.f32.xlu1 %v643_v42 }
 0x179   : > { %811 = vperm.xlu1 %1305, %v808_v47  }
 0x1ef   : > { %v640_v44 = vpop.xlane.xlu0 %639 }
 0x1f0   : > { %1266 = vmatpush3.msra.mxu1 %v640_v44 }
 0x1f1   : > { %v645_v46 = vpop.xlane.xlu1 %644  ;;  %1268 = vmatmul.mubr.msk.f32.vlgmr.msra.gmra.mxu1 %vm1854_vm2, %v1706_v43  ;;  %1270 = vmatprep.subr.mxu1 %v1324_v3 }
 0x1f2   : > { %1271 = vmatpush3.msra.mxu1 %v645_v46  ;;  %1272 = vmatprep.mubr.msk.f32.mxu1 %vm1853_vm6, %v1324_v3  ;;  %vm1899_vm6 = vcmp.lt.s32.totalorder %v1491_v17, 111 }
 0x1f5   : > { %1273 = vmatmul.mubr.msk.f32.vlgmr.msra.gmra.mxu1 %vm1854_vm2, %v1706_v43  ;;  %v812_v60 = vpop.permute.xlu1 %811  ;;  %vm1900_vm2 = vmmov %vm1899_vm6 }
 0x1f6   : > { %958 = vmatprep.mubr.f32.mxu1 %v1324_v3 }
 0x2b1   : > { %v716_v48 = vpop.f32.mrf.mxu1 }
 0x2b2   : > { %796 = vperm.xlu0 %1304, %v716_v48   ;;  %v790_v51 = vmul.f32 %v716_v48, %v716_v48  ;;  %v890_v48 = vld [vmem:[%s1831_s2] sm:$0xff] }
 0x2b3   : > { %v1269_v49 = vpop.f32.mrf.mxu1 }
 0x2b5   : > { %v786_v52 = vpop.f32.mrf.mxu1 }
 0x2b6   : > { %v791_v53 = vsub.f32 %v786_v52, %v790_v51 }
 0x2b7   : > { %v1274_v55 = vpop.f32.mrf.mxu1 }
 0x2b8   : > { %v792_v56 = vadd.f32 1e-05, %v791_v53 }
 0x2ba   : > { %1306 = vrsqrt.f32 %v792_v56  ;;  %v1131_v56 = vld [vmem:[%s1834_s5] sm:$0xff] }
 0x2c7   : > { %v1307_v57 = vpop.eup %1306 }
 0x2c8   : > { %803 = vperm.xlu1 %1305, %v1307_v57  }
 0x2cc   : > { %819 = vperm.xlu1 %1305, %v816_v58  }
 0x32d   : > { %v797_v61 = vpop.permute.xlu0 %796 }
 0x32e   : > { %v799_v62 = vsub.f32 %v633_v34, %v797_v61  ;;  %v800_v4 = vsub.f32 %v635_v35, %v797_v61 }
 0x343   : > { %v804_v5 = vpop.permute.xlu1 %803 }
 0x344   : > { %v806_v6 = vmul.f32 %v804_v5, %v799_v62  ;;  %v807_v7 = vmul.f32 %v804_v5, %v800_v4 }
 0x346   : > { %v814_v9 = vmul.f32 %v812_v60, %v806_v6  ;;  %v815_v11 = vmul.f32 %v812_v60, %v807_v7 }
 0x347   : > { %v820_v13 = vpop.permute.xlu1 %819 }
 0x348   : > { %v822_v10 = vadd.f32 %v820_v13, %v814_v9  ;;  %v823_v16 = vadd.f32 %v820_v13, %v815_v11 }
 0x34a   : > { %v824_v18 = vmax.f32 %v822_v10, 0.0  ;;  %v825_v19 = vmax.f32 %v823_v16, 0.0 }
 0x34c   : > { %866 = vrot.lane.b32.xlu0 %v824_v18, %s1321_s21  ;;  %882 = vrot.lane.b32.xlu1 %v824_v18, %s1320_s20 }
 0x350   : > { %858 = vrot.lane.b32.xlu0 %v824_v18, %s1322_s22  ;;  %884 = vrot.lane.b32.xlu1 %v825_v19, %s1320_s20 }
 0x354   : > { %850 = vrot.lane.b32.xlu0 %v824_v18, %s1323_s23  ;;  %874 = vrot.lane.b32.xlu1 %v824_v18, %s1319_s19 }
 0x358   : > { %842 = vrot.lane.b32.xlu0 %v824_v18, %s1325_s24  ;;  %876 = vrot.lane.b32.xlu1 %v825_v19, %s1319_s19 }
 0x35c   : > { %834 = vrot.lane.b32.xlu0 %v824_v18, %s1326_s25  ;;  %868 = vrot.lane.b32.xlu1 %v825_v19, %s1321_s21 }
 0x360   : > { %826 = vrot.lane.b32.xlu0 %v824_v18, %s1327_s26  ;;  %860 = vrot.lane.b32.xlu1 %v825_v19, %s1322_s22 }
 0x364   : > { %852 = vrot.lane.b32.xlu1 %v825_v19, %s1323_s23 }
 0x368   : > { %844 = vrot.lane.b32.xlu1 %v825_v19, %s1325_s24 }
 0x36c   : > { %836 = vrot.lane.b32.xlu1 %v825_v19, %s1326_s25 }
 0x370   : > { %828 = vrot.lane.b32.xlu1 %v825_v19, %s1327_s26 }
 0x3be   : > { %v883_v0 = vpop.permute.xlu1 %882  ;;  %v867_v25 = vpop.permute.xlu0 %866 }
 0x3c2   : > { %v885_v21 = vpop.permute.xlu1 %884  ;;  %v859_v28 = vpop.permute.xlu0 %858 }
 0x3c3   : > { %v886_v22 = vsel %vm1899_vm6, %v883_v0, %v885_v21  ;;  %v887_v24 = vsel %vm1900_vm2, %v885_v21, %v883_v0  ;;  %vm1912_vm6 = vnez %v1890_v14 }
 0x3c4   : > { %1234 = vmatprep.subr.msk.mxu1 %vm1510_vm13, %v887_v24  ;;  %vm1903_vm13 = vcmp.lt.s32.totalorder %v1491_v17, 113 }
 0x3c5   : > { %1235 = vmatpush1.msk.msra.mxu1 %vm1520_vm3, %v886_v22  ;;  %vm1904_vm3 = vmmov %vm1903_vm13 }
 0x3c6   : > { %v875_v27 = vpop.permute.xlu1 %874  ;;  %v851_v34 = vpop.permute.xlu0 %850 }
 0x3ca   : > { %v877_v15 = vpop.permute.xlu1 %876  ;;  %v843_v38 = vpop.permute.xlu0 %842 }
 0x3cb   : > { %v878_v30 = vsel %vm1901_vm10, %v875_v27, %v877_v15  ;;  %v879_v32 = vsel %vm1902_vm11, %v877_v15, %v875_v27  ;;  %vm1905_vm10 = vnez %v1876_v45  ;;  %vm1906_vm11 = vcmp.lt.s32.totalorder %v1491_v17, 127 }
 0x3cc   : > { %1236 = vmatprep.subr.msk.mxu1 %vm1530_vm0, %v879_v32  ;;  %vm1908_vm0 = vcmp.lt.s32.totalorder %v1491_v17, 1 }
 0x3cd   : > { %1237 = vmatpush1.msk.msra.mxu1 %vm1539_vm9, %v878_v30  ;;  %vm1907_vm9 = vmmov %vm1906_vm11 }
 0x3ce   : > { %v869_v26 = vpop.permute.xlu1 %868  ;;  %v835_v42 = vpop.permute.xlu0 %834 }
 0x3cf   : > { %v870_v31 = vsel %vm1903_vm13, %v867_v25, %v869_v26  ;;  %v871_v33 = vsel %vm1904_vm3, %v869_v26, %v867_v25  ;;  %vm1917_vm13 = vnez %v1896_v12  ;;  %vm1919_vm3 = vcmask 588800  }
 0x3d0   : > { %1238 = vmatprep.subr.msk.mxu1 %vm1555_vm12, %v871_v33  ;;  %vm1909_vm12 = vmmov %vm1908_vm0 }
 0x3d1   : > { %1239 = vmatpush1.msk.msra.mxu1 %vm1905_vm10, %v870_v31  ;;  %vm1921_vm10 = vmmov 0  }
 0x3d2   : > { %v861_v35 = vpop.permute.xlu1 %860  ;;  %v827_v46 = vpop.permute.xlu0 %826 }
 0x3d3   : > { %v862_v36 = vsel %vm1906_vm11, %v859_v28, %v861_v35  ;;  %v863_v37 = vsel %vm1907_vm9, %v861_v35, %v859_v28 }
 0x3d4   : > { %1240 = vmatprep.subr.msk.mxu1 %vm1589_vm8, %v863_v37  ;;  %vm1910_vm8 = vcmp.lt.s32.totalorder %v1491_v17, 15 }
 0x3d5   : > { %1241 = vmatpush1.msk.msra.mxu1 %vm1594_vm5, %v862_v36  ;;  %vm1911_vm5 = vmmov %vm1910_vm8 }
 0x3d6   : > { %916 = vmatprep.subr.mxu1 %v825_v19  ;;  %v853_v40 = vpop.permute.xlu1 %852 }
 0x3d7   : > { %v854_v45 = vsel %vm1908_vm0, %v851_v34, %v853_v40  ;;  %v855_v39 = vsel %vm1909_vm12, %v853_v40, %v851_v34  ;;  %917 = vmatpush1.msra.mxu1 %v824_v18 }
 0x3d8   : > { %1242 = vmatprep.subr.msk.mxu1 %vm1615_vm1, %v854_v45  ;;  %vm1913_vm1 = vcmp.lt.s32.totalorder %v1491_v17, 16 }
 0x3d9   : > { %1243 = vmatpush1.msk.msra.mxu1 %vm1621_vm7, %v855_v39  ;;  %vm1914_vm7 = vmmov %vm1913_vm1 }
 0x3da   : > { %v845_v50 = vpop.permute.xlu1 %844 }
 0x3db   : > { %v846_v54 = vsel %vm1910_vm8, %v843_v38, %v845_v50  ;;  %v847_v41 = vsel %vm1911_vm5, %v845_v50, %v843_v38 }
 0x3dc   : > { %1244 = vmatprep.subr.msk.mxu1 %vm1639_vm4, %v846_v54  ;;  %vm1915_vm4 = vcmp.lt.s32.totalorder %v1491_v17, 17 }
 0x3dd   : > { %1245 = vmatpush1.msk.msra.mxu1 %vm1912_vm6, %v847_v41  ;;  %vm1916_vm2 = vmmov %vm1915_vm4 }
 0x3de   : > { %v837_v44 = vpop.permute.xlu1 %836 }
 0x3df   : > { %v838_v59 = vsel %vm1913_vm1, %v835_v42, %v837_v44  ;;  %v839_v63 = vsel %vm1914_vm7, %v837_v44, %v835_v42 }
 0x3e0   : > { %1246 = vmatprep.subr.msk.mxu1 %vm1659_vm14, %v838_v59  ;;  %vm1918_vm14 = vnez %v1898_v29 }
 0x3e1   : > { %1247 = vmatpush1.msk.msra.mxu1 %vm1664_vm15, %v839_v63  ;;  %vm1920_vm15 = vcmask 64512  }
 0x3e2   : > { %v829_v47 = vpop.permute.xlu1 %828  ;;  %vm1922_vm11 = vmmov %vm1920_vm15 }
 0x3e3   : > { %v830_v8 = vsel %vm1915_vm4, %v827_v46, %v829_v47  ;;  %v831_v14 = vsel %vm1916_vm2, %v829_v47, %v827_v46 }
 0x3e4   : > { %1248 = vmatprep.subr.msk.mxu1 %vm1917_vm13, %v830_v8 }
 0x3e5   : > { %1249 = vmatpush1.msk.msra.mxu1 %vm1918_vm14, %v831_v14 }
 0x3e6   : > { %1250 = vmatmul.mubr.msk.f32.vlgmr.msra.gmra.mxu1 %vm1919_vm3, %v890_v48 }
 0x4a6   : > { %v960_v20 = vpop.f32.mrf.mxu1 }
 0x4a7   : > { %v968_v52 = vmul.f32 %v960_v20, %v960_v20 }
 0x4a8   : > { %v962_v23 = vpop.f32.mrf.mxu1 }
 0x4a9   : > { %v969_v49 = vmul.f32 %v962_v23, %v962_v23  ;;  %v965_v51 = vadd.f32 %v962_v23, %v960_v20 }
 0x4ab   : > { %966 = vadd.xlane.f32.xlu0 %v965_v51  ;;  %v970_v17 = vadd.f32 %v969_v49, %v968_v52 }
 0x4ad   : > { %971 = vadd.xlane.f32.xlu1 %v970_v17 }
 0x534   : > { %v967_v53 = vpop.xlane.xlu0 %966 }
 0x535   : > { %1276 = vmatpush3.msra.mxu0 %v967_v53 }
 0x536   : > { %v972_v55 = vpop.xlane.xlu1 %971  ;;  %1278 = vmatmul.mubr.msk.f32.vlgmr.msra.gmra.mxu0 %vm1920_vm15, %v1706_v43  ;;  %1280 = vmatprep.subr.mxu0 %v1324_v3 }
 0x537   : > { %1281 = vmatpush3.msra.mxu0 %v972_v55  ;;  %1282 = vmatprep.mubr.msk.f32.mxu0 %vm1921_vm10, %v1324_v3  ;;  %v1139_v3 = vld [vmem:[%s1835_s6] sm:$0xff] }
 0x53a   : > { %1283 = vmatmul.mubr.msk.f32.vlgmr.msra.gmra.mxu0 %vm1922_vm11, %v1706_v43 }
 0x5f6   : > { %v1039_v12 = vpop.f32.mrf.mxu0 }
 0x5f7   : > { %1119 = vperm.xlu0 %1304, %v1039_v12   ;;  %v1113_v57 = vmul.f32 %v1039_v12, %v1039_v12 }
 0x5f8   : > { %v1279_v29 = vpop.f32.mrf.mxu0 }
 0x5fa   : > { %v1109_v58 = vpop.f32.mrf.mxu0 }
 0x5fb   : > { %v1114_v60 = vsub.f32 %v1109_v58, %v1113_v57  ;;  %1134 = vperm.xlu0 %1304, %v1131_v56  }
 0x5fc   : > { %v1284_v61 = vpop.f32.mrf.mxu0 }
 0x5fd   : > { %v1115_v62 = vadd.f32 1e-05, %v1114_v60 }
 0x5ff   : > { %1308 = vrsqrt.f32 %v1115_v62 }
 0x60c   : > { %v1309_v4 = vpop.eup %1308 }
 0x60d   : > { %1126 = vperm.xlu1 %1305, %v1309_v4  }
 0x611   : > { %1142 = vperm.xlu1 %1305, %v1139_v3  }
 0x672   : > { %v1120_v43 = vpop.permute.xlu0 %1119 }
 0x673   : > { %v1122_v5 = vsub.f32 %v960_v20, %v1120_v43  ;;  %v1123_v6 = vsub.f32 %v962_v23, %v1120_v43 }
 0x676   : > { %v1135_v13 = vpop.permute.xlu0 %1134 }
 0x688   : > { %v1127_v7 = vpop.permute.xlu1 %1126 }
 0x689   : > { %v1129_v9 = vmul.f32 %v1127_v7, %v1122_v5  ;;  %v1130_v11 = vmul.f32 %v1127_v7, %v1123_v6 }
 0x68b   : > { %v1137_v10 = vmul.f32 %v1135_v13, %v1129_v9  ;;  %v1138_v16 = vmul.f32 %v1135_v13, %v1130_v11 }
 0x68c   : > { %v1143_v18 = vpop.permute.xlu1 %1142 }
 0x68d   : > { %v1145_v19 = vadd.f32 %v1143_v18, %v1137_v10  ;;  %v1146_v0 = vadd.f32 %v1143_v18, %v1138_v16 }
 0x68f   : > { %v1147_v21 = vadd.f32 %v1145_v19, %v1402_v1  ;;  %v1148_v22 = vadd.f32 %v1146_v0, %v1408_v2 }
 0x691   : > { %1149 = vst [vmem:[%s359_s30] sm:$0xff] %v1147_v21  ;;  %1150 = vst [vmem:[%s359_s30 + $0x8] sm:$0xff] %v1148_v22 }
 0x692 PF: > { %s20_s13 = sadd.s32 1, %s1316_s13  }
 0x693   : > { %p17_p4 = scmp.ge.s32.totalorder %s20_s13, 4  }
 0x695   :  { %19 = sbr.rel (!%p17_p4) target bundleno = 1 (0x1), region = 90 }

</bundles_post_ra>
